<compile_context>
chip_gen: v7x
topology: tpu7x:2x2x1
jax: 0.10.0
libtpu: 0.0.40
codegen_flags: <defaults>
</compile_context>

<pallas_src>
import functools

import jax
import jax.numpy as jnp
from jax.experimental import pallas as pl
from jax.experimental.pallas import tpu as pltpu

CM0_DIM = 256          # GATConv out_channels
CM0_NUM = 8            # number of HeteroConv layers
EDGE_DIM = 2           # GATConv edge_dim
EDGE_MLP_DIM = 32      # edge_mlp1 out
NUM_EDGE_CLASSES = 5   # num_edge_classes


# ----------------------------------------------------------------------------
# In-kernel GATConv for one relation (heads=1, edge_dim=2, add_self_loops=False)
# ----------------------------------------------------------------------------
def _gat_relation(x_src, x_dst, eattr, g_src, g_dst, scat,
                  w_src, w_satt, w_datt, w_eatt, bias):
    """x_src/x_dst: [Ns,C]/[Nd,C] f32 (layer-0 raw features zero-padded to C).
    eattr: [E,2] f32.  g_src:[E,Ns], g_dst:[E,Nd], scat:[Nd,E] one-hot bf16.
    w_src:[C,C] bf16.  w_satt/w_datt:[C,1] f32 (folded W@att).  w_eatt:[2,1] f32.
    bias:[1,C] f32.  Returns [Nd,C] f32 (pre-ReLU, pre-residual)."""
    f32, bf16 = jnp.float32, jnp.bfloat16

    # message transform (MXU, bf16 operands, f32 accumulation)
    h_s = jnp.dot(x_src.astype(bf16), w_src, preferred_element_type=f32)      # [Ns,C]

    # folded attention logits: lin_dst / lin_edge outputs never materialized
    a_s = jnp.dot(x_src, w_satt, preferred_element_type=f32)                  # [Ns,1]
    a_d = jnp.dot(x_dst, w_datt, preferred_element_type=f32)                  # [Nd,1]
    a_e = jnp.dot(eattr, w_eatt, preferred_element_type=f32)                  # [E,1]

    gs_f = g_src.astype(f32)
    gd_f = g_dst.astype(f32)

    # gather source messages / attention logits onto edges
    hs_e = jnp.dot(g_src, h_s.astype(bf16), preferred_element_type=f32)       # [E,C]
    alpha = (jnp.dot(gs_f, a_s, preferred_element_type=f32)
             + jnp.dot(gd_f, a_d, preferred_element_type=f32)
             + a_e)                                                           # [E,1]
    alpha = jnp.where(alpha > 0, alpha, 0.2 * alpha)                          # LeakyReLU(0.2)

    # numerically stable segment softmax: subtract per-destination max (as PyG)
    masked = jnp.where(gd_f > 0, alpha, -1e30)                                # [E,Nd]
    seg_max = jnp.max(masked, axis=0, keepdims=True)                          # [1,Nd]
    max_e = jnp.sum(gd_f * seg_max, axis=1, keepdims=True)                    # [E,1]
    p = jnp.exp(alpha - max_e)                                                # [E,1] <= 1

    # weighted aggregation:  out_j = (sum_e p_e * m_e) / (sum_e p_e + 1e-16)
    num = jnp.dot(scat, (hs_e * p).astype(bf16), preferred_element_type=f32)  # [Nd,C]
    den = jnp.dot(scat.astype(f32), p, preferred_element_type=f32)            # [Nd,1]
    inv = pl.reciprocal(den + 1e-16, approx=True)
    return num * inv + bias                                                   # [Nd,C]


# ----------------------------------------------------------------------------
# Fully fused HELPv3 forward: 8-layer HeteroConv stack + pooling + heads in one
# pallas_call; grid over layers, node state resident in VMEM scratch.
# ----------------------------------------------------------------------------
def _helpv3_kernel(xh0_ref, xo0_ref, ea_io_ref, ea_oi_ref,
                   gs_io_ref, gd_io_ref, sc_io_ref,
                   gs_oi_ref, gd_oi_ref, sc_oi_ref,
                   wsrc_ref, wsatt_ref, wdatt_ref, weatt_ref, bias_ref,
                   ph_ref, po_ref, pe_ref, sel_ref,
                   we1_ref, be1_ref, wph_ref, wpo_ref, wpe_ref, bp_ref,
                   o_ref, sth_ref, sto_ref):
    f32 = jnp.float32
    l = pl.program_id(0)

    @pl.when(l == 0)
    def _():
        sth_ref[...] = xh0_ref[...]
        sto_ref[...] = xo0_ref[...]

    xh = sth_ref[...]                                   # [Nh,C]  current 'human' state
    xo = sto_ref[...]                                   # [No,C]  current 'object' state
    res_scale = (l > 0).astype(f32)                     # layer 0 has no residual

    # relation 0: ('human','interact','object')   src=human, dst=object
    out_o = _gat_relation(xh, xo, ea_io_ref[...],
                          gs_io_ref[...], gd_io_ref[...], sc_io_ref[...],
                          wsrc_ref[0], wsatt_ref[0], wdatt_ref[0],
                          weatt_ref[0], bias_ref[0])
    # relation 1: ('object','interacted_by','human')   src=object, dst=human
    out_h = _gat_relation(xo, xh, ea_oi_ref[...],
                          gs_oi_ref[...], gd_oi_ref[...], sc_oi_ref[...],
                          wsrc_ref[1], wsatt_ref[1], wdatt_ref[1],
                          weatt_ref[1], bias_ref[1])

    # HeteroConv aggr='sum' is trivial (one relation per dst type);
    # then relu(.) (+ previous layer output for layers > 0).
    new_h = jnp.maximum(out_h, 0.0) + res_scale * xh
    new_o = jnp.maximum(out_o, 0.0) + res_scale * xo
    sth_ref[...] = new_h
    sto_ref[...] = new_o

    # ---- fused tail on the last layer: pooling + edge MLP + merged heads ----
    @pl.when(l == pl.num_programs(0) - 1)
    def _():
        pooled_h = jnp.dot(ph_ref[...], new_h, preferred_element_type=f32)    # [B,C]
        pooled_o = jnp.dot(po_ref[...], new_o, preferred_element_type=f32)    # [B,C]
        human = jnp.dot(sel_ref[...], pooled_h, preferred_element_type=f32)   # [B,C]
        obj = jnp.dot(sel_ref[...], pooled_o, preferred_element_type=f32)     # [B,C]

        # edge_attr = relu(edge_mlp1(edge_attr));  then mean pooled per graph
        ef = jnp.maximum(jnp.dot(ea_io_ref[...], we1_ref[...],
                                 preferred_element_type=f32) + be1_ref[...],
                         0.0)                                                 # [E,32]
        pooled_e = jnp.dot(pe_ref[...], ef, preferred_element_type=f32)       # [B,32]

        # graph_emb = [human | obj | pooled_e]; prediction weights are pre-split
        # so no in-kernel concat is needed. F.dropout(p=0.2) is identity (eval).
        y = (jnp.dot(human, wph_ref[...], preferred_element_type=f32)
             + jnp.dot(obj, wpo_ref[...], preferred_element_type=f32)
             + jnp.dot(pooled_e, wpe_ref[...], preferred_element_type=f32)
             + bp_ref[...])                                                   # [B,10]

        def _softmax(z):
            m = jnp.max(z, axis=-1, keepdims=True)
            e = jnp.exp(z - m)
            return e * pl.reciprocal(jnp.sum(e, axis=-1, keepdims=True),
                                     approx=True)

        y1 = _softmax(y[:, 0:NUM_EDGE_CLASSES])
        y2 = _softmax(y[:, NUM_EDGE_CLASSES:2 * NUM_EDGE_CLASSES])
        o_ref[...] = jnp.concatenate([y1, y2], axis=-1)


def helpv3_fused(x_h, x_o, ea_io, ea_oi, gs_io, gd_io, sc_io,
                 gs_oi, gd_oi, sc_oi, p_h, p_o, p_e, sel,
                 gat_pk, tail_pk):
    n_h, n_o = x_h.shape[0], x_o.shape[0]
    num_layers = gat_pk['wsrc'].shape[0]
    b = p_h.shape[0]

    fixed2d = lambda a: pl.BlockSpec(a.shape, lambda l: (0, 0))
    per_layer = lambda a: pl.BlockSpec((None,) + a.shape[1:],
                                       lambda l: (l, 0, 0, 0))

    fixed_args = (x_h, x_o, ea_io, ea_oi,
                  gs_io, gd_io, sc_io, gs_oi, gd_oi, sc_oi)
    layer_args = (gat_pk['wsrc'], gat_pk['wsatt'], gat_pk['wdatt'],
                  gat_pk['weatt'], gat_pk['bias'])
    tail_args = (p_h, p_o, p_e, sel,
                 tail_pk['w_e1'], tail_pk['b_e1'],
                 tail_pk['wp_h'], tail_pk['wp_o'], tail_pk['wp_e'],
                 tail_pk['bp'])

    in_specs = ([fixed2d(a) for a in fixed_args]
                + [per_layer(a) for a in layer_args]
                + [fixed2d(a) for a in tail_args])

    return pl.pallas_call(
        _helpv3_kernel,
        grid=(num_layers,),
        in_specs=in_specs,
        out_specs=pl.BlockSpec((b, 2 * NUM_EDGE_CLASSES), lambda l: (0, 0)),
        out_shape=jax.ShapeDtypeStruct((b, 2 * NUM_EDGE_CLASSES), jnp.float32),
        scratch_shapes=[pltpu.VMEM((n_h, CM0_DIM), jnp.float32),
                        pltpu.VMEM((n_o, CM0_DIM), jnp.float32)],
        compiler_params=pltpu.CompilerParams(
            dimension_semantics=("arbitrary",)),
    )(*fixed_args, *layer_args, *tail_args)


# ----------------------------------------------------------------------------
# Parameter initialization (deterministic, glorot-style) + packing
# ----------------------------------------------------------------------------
def _glorot(key, shape):
    scale = jnp.sqrt(6.0 / (shape[0] + shape[1]))
    return jax.random.uniform(key, shape, jnp.float32, -scale, scale)


def _init_gat(key, f_src, f_dst, c):
    ks = jax.random.split(key, 4)
    return dict(
        w_src=_glorot(ks[0], (f_src, c)),
        w_dst=_glorot(ks[1], (f_dst, c)),
        w_edge=_glorot(ks[2], (EDGE_DIM, c)),
        att=_glorot(ks[3], (3, c)) * 0.1,          # rows: att_src, att_dst, att_edge
        bias=jnp.zeros((1, c), jnp.float32),
    )


def init_params(key, f_h, f_o):
    keys = jax.random.split(key, CM0_NUM + 3)
    layers = []
    for l in range(CM0_NUM):
        kio, koi = jax.random.split(keys[l])
        fs_io = f_h if l == 0 else CM0_DIM
        fd_io = f_o if l == 0 else CM0_DIM
        fs_oi = f_o if l == 0 else CM0_DIM
        fd_oi = f_h if l == 0 else CM0_DIM
        layers.append({
            'io': _init_gat(kio, fs_io, fd_io, CM0_DIM),   # ('human','interact','object')
            'oi': _init_gat(koi, fs_oi, fd_oi, CM0_DIM),   # ('object','interacted_by','human')
        })
    k1, k2, k3 = keys[CM0_NUM], keys[CM0_NUM + 1], keys[CM0_NUM + 2]
    graph_dim = 2 * CM0_DIM + EDGE_MLP_DIM
    return {
        'layers': layers,
        'edge_mlp1': dict(w=_glorot(k1, (EDGE_DIM, EDGE_MLP_DIM)),
                          b=jnp.zeros((1, EDGE_MLP_DIM), jnp.float32)),
        'pred_mlp1': dict(w=_glorot(k2, (graph_dim, NUM_EDGE_CLASSES)),
                          b=jnp.zeros((1, NUM_EDGE_CLASSES), jnp.float32)),
        'pred_mlp2': dict(w=_glorot(k3, (graph_dim, NUM_EDGE_CLASSES)),
                          b=jnp.zeros((1, NUM_EDGE_CLASSES), jnp.float32)),
    }


def _pad_rows(w, rows):
    return jnp.pad(w, ((0, rows - w.shape[0]), (0, 0)))


def pack_gat_params(params):
    """Stack per-layer / per-relation GAT params; fold attention vectors."""
    wsrc, wsatt, wdatt, weatt, bias = [], [], [], [], []
    for lp in params['layers']:
        rel_ws, rel_sa, rel_da, rel_ea, rel_b = [], [], [], [], []
        for rel in ('io', 'oi'):
            p = lp[rel]
            w_s = _pad_rows(p['w_src'], CM0_DIM)               # [C,C]
            w_d = _pad_rows(p['w_dst'], CM0_DIM)               # [C,C]
            att = p['att']                                     # [3,C]
            rel_ws.append(w_s)
            rel_sa.append(w_s @ att[0:1, :].T)                 # [C,1]  fold: lin_src@att_src
            rel_da.append(w_d @ att[1:2, :].T)                 # [C,1]  fold: lin_dst@att_dst
            rel_ea.append(p['w_edge'] @ att[2:3, :].T)         # [2,1]  fold: lin_edge@att_edge
            rel_b.append(p['bias'])                            # [1,C]
        wsrc.append(jnp.stack(rel_ws))
        wsatt.append(jnp.stack(rel_sa))
        wdatt.append(jnp.stack(rel_da))
        weatt.append(jnp.stack(rel_ea))
        bias.append(jnp.stack(rel_b))
    return dict(
        wsrc=jnp.stack(wsrc).astype(jnp.bfloat16),   # [L,2,C,C]
        wsatt=jnp.stack(wsatt),                      # [L,2,C,1] f32
        wdatt=jnp.stack(wdatt),                      # [L,2,C,1] f32
        weatt=jnp.stack(weatt),                      # [L,2,2,1] f32
        bias=jnp.stack(bias),                        # [L,2,1,C] f32
    )


def pack_tail_params(params):
    """Merge the two prediction heads ([544,5]+[544,5] -> [544,10]) and split
    the merged weight by graph-embedding segment (human / object / edge)."""
    w1, b1 = params['pred_mlp1']['w'], params['pred_mlp1']['b']
    w2, b2 = params['pred_mlp2']['w'], params['pred_mlp2']['b']
    wp = jnp.concatenate([w1, w2], axis=1)                     # [544,10]
    return dict(
        w_e1=params['edge_mlp1']['w'], b_e1=params['edge_mlp1']['b'],
        wp_h=wp[:CM0_DIM],                                     # [256,10]
        wp_o=wp[CM0_DIM:2 * CM0_DIM],                          # [256,10]
        wp_e=wp[2 * CM0_DIM:],                                 # [32,10]
        bp=jnp.concatenate([b1, b2], axis=1),                  # [1,10]
    )


# ----------------------------------------------------------------------------
# Forward pass
# ----------------------------------------------------------------------------
def _mean_pool_matrix(batch, num_graphs):
    onehot = (batch[None, :] == jnp.arange(num_graphs)[:, None]).astype(jnp.float32)
    counts = jnp.maximum(onehot.sum(axis=1, keepdims=True), 1.0)
    return onehot / counts


@functools.partial(jax.jit, static_argnames=('num_graphs',))
def helpv3_forward(gat_packed, tail_packed, x_h, x_o,
                   edge_index_io, eattr_io, edge_index_oi, eattr_oi,
                   hbatch, obatch, num_graphs):
    n_h, n_o = x_h.shape[0], x_o.shape[0]
    h_src, o_dst = edge_index_io
    o_src, h_dst = edge_index_oi
    bf16 = jnp.bfloat16

    # zero-pad raw features to CM0_DIM so layer-0 weights stack with later layers
    x_h_pad = jnp.pad(x_h, ((0, 0), (0, CM0_DIM - x_h.shape[1])))
    x_o_pad = jnp.pad(x_o, ((0, 0), (0, CM0_DIM - x_o.shape[1])))

    # one-hot gather/scatter matrices (0/1 values are exact in bf16)
    g_src_io = jax.nn.one_hot(h_src, n_h, dtype=bf16)   # [E, Nh]
    g_dst_io = jax.nn.one_hot(o_dst, n_o, dtype=bf16)   # [E, No]
    scat_io = g_dst_io.T                                # [No, E]
    g_src_oi = jax.nn.one_hot(o_src, n_o, dtype=bf16)
    g_dst_oi = jax.nn.one_hot(h_dst, n_h, dtype=bf16)
    scat_oi = g_dst_oi.T

    # mean-pool matrices
    p_h = _mean_pool_matrix(hbatch, num_graphs)
    p_o = _mean_pool_matrix(obatch, num_graphs)
    edge_batch = hbatch[h_src]
    p_e = _mean_pool_matrix(edge_batch, num_graphs)

    # concat_idx = torch.unique(hbatch); assumes every graph has >= 1 human node
    # (the PyTorch reference implicitly requires this, otherwise its cat() fails).
    concat_idx = jnp.unique(hbatch, size=num_graphs)
    sel = jax.nn.one_hot(concat_idx, num_graphs, dtype=jnp.float32)   # [B,B]

    probs = helpv3_fused(x_h_pad, x_o_pad, eattr_io, eattr_oi,
                         g_src_io, g_dst_io, scat_io,
                         g_src_oi, g_dst_oi, scat_oi,
                         p_h, p_o, p_e, sel, gat_packed, tail_packed)  # [B,10]
    return probs.reshape(num_graphs, 2, NUM_EDGE_CLASSES)


fwd = helpv3_forward


if __name__ == "__main__":
    key = jax.random.PRNGKey(0)
    k_param, k_xh, k_xo, k_eio, k_eoi = jax.random.split(key, 5)

    N_H, N_O, F_H, F_O, E, B = 8, 8, 16, 16, 16, 2

    x_h = jax.random.normal(k_xh, (N_H, F_H), jnp.float32)
    x_o = jax.random.normal(k_xo, (N_O, F_O), jnp.float32)

    # ('human','interact','object') edges; reverse relation uses reversed index
    h_idx = jnp.array([0, 0, 1, 1, 2, 2, 3, 3, 4, 4, 5, 5, 6, 6, 7, 7], dtype=jnp.int32)
    o_idx = jnp.array([0, 1, 1, 2, 2, 3, 3, 0, 4, 5, 5, 6, 6, 7, 7, 4], dtype=jnp.int32)
    eattr_io = jax.random.normal(k_eio, (E, EDGE_DIM), jnp.float32)
    eattr_oi = jax.random.normal(k_eoi, (E, EDGE_DIM), jnp.float32)

    hbatch = jnp.array([0, 0, 0, 0, 1, 1, 1, 1], dtype=jnp.int32)
    obatch = jnp.array([0, 0, 0, 0, 1, 1, 1, 1], dtype=jnp.int32)

    params = init_params(k_param, F_H, F_O)
    gat_packed = pack_gat_params(params)     # packed once, outside the jit
    tail_packed = pack_tail_params(params)

    out = fwd(gat_packed, tail_packed, x_h, x_o, (h_idx, o_idx), eattr_io,
              (o_idx, h_idx), eattr_oi, hbatch, obatch, num_graphs=B)
    out = jax.block_until_ready(out)

    assert out.shape == (B, 2, NUM_EDGE_CLASSES)
    assert bool(jnp.all(jnp.isfinite(out)))
    print("KERNEL_OK")
</pallas_src>

<mosaic_0001>
module attributes {stable_mosaic.version = 11 : i64} {
  func.func @_helpv3_kernel(%arg0: i32, %arg1: memref<8x256xf32, #tpu.memory_space<vmem>>, %arg2: memref<8x256xf32, #tpu.memory_space<vmem>>, %arg3: memref<16x2xf32, #tpu.memory_space<vmem>>, %arg4: memref<16x2xf32, #tpu.memory_space<vmem>>, %arg5: memref<16x8xbf16, #tpu.memory_space<vmem>>, %arg6: memref<16x8xbf16, #tpu.memory_space<vmem>>, %arg7: memref<8x16xbf16, #tpu.memory_space<vmem>>, %arg8: memref<16x8xbf16, #tpu.memory_space<vmem>>, %arg9: memref<16x8xbf16, #tpu.memory_space<vmem>>, %arg10: memref<8x16xbf16, #tpu.memory_space<vmem>>, %arg11: memref<1x2x256x256xbf16, #tpu.memory_space<vmem>>, %arg12: memref<1x2x256x1xf32, #tpu.memory_space<vmem>>, %arg13: memref<1x2x256x1xf32, #tpu.memory_space<vmem>>, %arg14: memref<1x2x2x1xf32, #tpu.memory_space<vmem>>, %arg15: memref<1x2x1x256xf32, #tpu.memory_space<vmem>>, %arg16: memref<2x8xf32, #tpu.memory_space<vmem>>, %arg17: memref<2x8xf32, #tpu.memory_space<vmem>>, %arg18: memref<2x16xf32, #tpu.memory_space<vmem>>, %arg19: memref<2x2xf32, #tpu.memory_space<vmem>>, %arg20: memref<2x32xf32, #tpu.memory_space<vmem>>, %arg21: memref<1x32xf32, #tpu.memory_space<vmem>>, %arg22: memref<256x10xf32, #tpu.memory_space<vmem>>, %arg23: memref<256x10xf32, #tpu.memory_space<vmem>>, %arg24: memref<32x10xf32, #tpu.memory_space<vmem>>, %arg25: memref<1x10xf32, #tpu.memory_space<vmem>>, %arg26: memref<2x10xf32, #tpu.memory_space<vmem>>, %arg27: memref<8x256xf32, #tpu.memory_space<vmem>>, %arg28: memref<8x256xf32, #tpu.memory_space<vmem>>) attributes {dimension_semantics = [#tpu.dimension_semantics<arbitrary>], iteration_bounds = array<i64: 8>, scalar_prefetch = 0 : i64, scratch_operands = 2 : i64, tpu.core_type = #tpu.core_type<tc>, window_params = [{pipeline_mode = #tpu.pipeline_mode<synchronous>, transform_indices = @transform_0, window_bounds = array<i64: 8, 256>}, {pipeline_mode = #tpu.pipeline_mode<synchronous>, transform_indices = @transform_1, window_bounds = array<i64: 8, 256>}, {pipeline_mode = #tpu.pipeline_mode<synchronous>, transform_indices = @transform_2, window_bounds = array<i64: 16, 2>}, {pipeline_mode = #tpu.pipeline_mode<synchronous>, transform_indices = @transform_3, window_bounds = array<i64: 16, 2>}, {pipeline_mode = #tpu.pipeline_mode<synchronous>, transform_indices = @transform_4, window_bounds = array<i64: 16, 8>}, {pipeline_mode = #tpu.pipeline_mode<synchronous>, transform_indices = @transform_5, window_bounds = array<i64: 16, 8>}, {pipeline_mode = #tpu.pipeline_mode<synchronous>, transform_indices = @transform_6, window_bounds = array<i64: 8, 16>}, {pipeline_mode = #tpu.pipeline_mode<synchronous>, transform_indices = @transform_7, window_bounds = array<i64: 16, 8>}, {pipeline_mode = #tpu.pipeline_mode<synchronous>, transform_indices = @transform_8, window_bounds = array<i64: 16, 8>}, {pipeline_mode = #tpu.pipeline_mode<synchronous>, transform_indices = @transform_9, window_bounds = array<i64: 8, 16>}, {transform_indices = @transform_10, window_bounds = array<i64: 1, 2, 256, 256>}, {transform_indices = @transform_11, window_bounds = array<i64: 1, 2, 256, 1>}, {transform_indices = @transform_12, window_bounds = array<i64: 1, 2, 256, 1>}, {transform_indices = @transform_13, window_bounds = array<i64: 1, 2, 2, 1>}, {transform_indices = @transform_14, window_bounds = array<i64: 1, 2, 1, 256>}, {pipeline_mode = #tpu.pipeline_mode<synchronous>, transform_indices = @transform_15, window_bounds = array<i64: 2, 8>}, {pipeline_mode = #tpu.pipeline_mode<synchronous>, transform_indices = @transform_16, window_bounds = array<i64: 2, 8>}, {pipeline_mode = #tpu.pipeline_mode<synchronous>, transform_indices = @transform_17, window_bounds = array<i64: 2, 16>}, {pipeline_mode = #tpu.pipeline_mode<synchronous>, transform_indices = @transform_18, window_bounds = array<i64: 2, 2>}, {pipeline_mode = #tpu.pipeline_mode<synchronous>, transform_indices = @transform_19, window_bounds = array<i64: 2, 32>}, {pipeline_mode = #tpu.pipeline_mode<synchronous>, transform_indices = @transform_20, window_bounds = array<i64: 1, 32>}, {pipeline_mode = #tpu.pipeline_mode<synchronous>, transform_indices = @transform_21, window_bounds = array<i64: 256, 10>}, {pipeline_mode = #tpu.pipeline_mode<synchronous>, transform_indices = @transform_22, window_bounds = array<i64: 256, 10>}, {pipeline_mode = #tpu.pipeline_mode<synchronous>, transform_indices = @transform_23, window_bounds = array<i64: 32, 10>}, {pipeline_mode = #tpu.pipeline_mode<synchronous>, transform_indices = @transform_24, window_bounds = array<i64: 1, 10>}, {pipeline_mode = #tpu.pipeline_mode<synchronous>, transform_indices = @transform_25, window_bounds = array<i64: 2, 10>}]} {
    %c0_i32 = arith.constant 0 : i32
    %0 = arith.cmpi eq, %arg0, %c0_i32 : i32
    %1 = arith.extui %0 : i1 to i32
    %c0_i32_0 = arith.constant 0 : i32
    %2 = arith.cmpi ne, %1, %c0_i32_0 : i32
    scf.if %2 {
      %c0_98 = arith.constant 0 : index
      %c0_99 = arith.constant 0 : index
      %141 = vector.load %arg1[%c0_98, %c0_99] : memref<8x256xf32, #tpu.memory_space<vmem>>, vector<8x256xf32>
      %c0_100 = arith.constant 0 : index
      %c0_101 = arith.constant 0 : index
      %142 = vector.load %arg27[%c0_100, %c0_101] : memref<8x256xf32, #tpu.memory_space<vmem>>, vector<8x256xf32>
      tpu.vector_store %arg27[%c0_100, %c0_101], %141 {strides = array<i32>} : memref<8x256xf32, #tpu.memory_space<vmem>>, vector<8x256xf32>,
      %c0_102 = arith.constant 0 : index
      %c0_103 = arith.constant 0 : index
      %143 = vector.load %arg2[%c0_102, %c0_103] : memref<8x256xf32, #tpu.memory_space<vmem>>, vector<8x256xf32>
      %c0_104 = arith.constant 0 : index
      %c0_105 = arith.constant 0 : index
      %144 = vector.load %arg28[%c0_104, %c0_105] : memref<8x256xf32, #tpu.memory_space<vmem>>, vector<8x256xf32>
      tpu.vector_store %arg28[%c0_104, %c0_105], %143 {strides = array<i32>} : memref<8x256xf32, #tpu.memory_space<vmem>>, vector<8x256xf32>,
    } else {
    }
    %c0 = arith.constant 0 : index
    %c0_1 = arith.constant 0 : index
    %3 = vector.load %arg27[%c0, %c0_1] : memref<8x256xf32, #tpu.memory_space<vmem>>, vector<8x256xf32>
    %c0_2 = arith.constant 0 : index
    %c0_3 = arith.constant 0 : index
    %4 = vector.load %arg28[%c0_2, %c0_3] : memref<8x256xf32, #tpu.memory_space<vmem>>, vector<8x256xf32>
    %c0_i32_4 = arith.constant 0 : i32
    %5 = arith.cmpi sgt, %arg0, %c0_i32_4 : i32
    %6 = arith.extui %5 : i1 to i32
    %7 = arith.sitofp %6 : i32 to f32
    %c0_5 = arith.constant 0 : index
    %c0_6 = arith.constant 0 : index
    %8 = vector.load %arg3[%c0_5, %c0_6] : memref<16x2xf32, #tpu.memory_space<vmem>>, vector<16x2xf32>
    %c0_7 = arith.constant 0 : index
    %c0_8 = arith.constant 0 : index
    %9 = vector.load %arg5[%c0_7, %c0_8] : memref<16x8xbf16, #tpu.memory_space<vmem>>, vector<16x8xbf16>
    %c0_9 = arith.constant 0 : index
    %c0_10 = arith.constant 0 : index
    %10 = vector.load %arg6[%c0_9, %c0_10] : memref<16x8xbf16, #tpu.memory_space<vmem>>, vector<16x8xbf16>
    %c0_11 = arith.constant 0 : index
    %c0_12 = arith.constant 0 : index
    %11 = vector.load %arg7[%c0_11, %c0_12] : memref<8x16xbf16, #tpu.memory_space<vmem>>, vector<8x16xbf16>
    %c0_13 = arith.constant 0 : index
    %c0_14 = arith.constant 0 : index
    %c0_15 = arith.constant 0 : index
    %c0_16 = arith.constant 0 : index
    %12 = vector.load %arg11[%c0_13, %c0_14, %c0_15, %c0_16] : memref<1x2x256x256xbf16, #tpu.memory_space<vmem>>, vector<1x1x256x256xbf16>
    %13 = vector.shape_cast %12 : vector<1x1x256x256xbf16> to vector<256x256xbf16>
    %c0_17 = arith.constant 0 : index
    %c0_18 = arith.constant 0 : index
    %c0_19 = arith.constant 0 : index
    %c0_20 = arith.constant 0 : index
    %14 = vector.load %arg12[%c0_17, %c0_18, %c0_19, %c0_20] : memref<1x2x256x1xf32, #tpu.memory_space<vmem>>, vector<1x1x256x1xf32>
    %15 = vector.shape_cast %14 : vector<1x1x256x1xf32> to vector<256x1xf32>
    %c0_21 = arith.constant 0 : index
    %c0_22 = arith.constant 0 : index
    %c0_23 = arith.constant 0 : index
    %c0_24 = arith.constant 0 : index
    %16 = vector.load %arg13[%c0_21, %c0_22, %c0_23, %c0_24] : memref<1x2x256x1xf32, #tpu.memory_space<vmem>>, vector<1x1x256x1xf32>
    %17 = vector.shape_cast %16 : vector<1x1x256x1xf32> to vector<256x1xf32>
    %c0_25 = arith.constant 0 : index
    %c0_26 = arith.constant 0 : index
    %c0_27 = arith.constant 0 : index
    %c0_28 = arith.constant 0 : index
    %18 = vector.load %arg14[%c0_25, %c0_26, %c0_27, %c0_28] : memref<1x2x2x1xf32, #tpu.memory_space<vmem>>, vector<1x1x2x1xf32>
    %19 = vector.shape_cast %18 : vector<1x1x2x1xf32> to vector<2x1xf32>
    %c0_29 = arith.constant 0 : index
    %c0_30 = arith.constant 0 : index
    %c0_31 = arith.constant 0 : index
    %c0_32 = arith.constant 0 : index
    %20 = vector.load %arg15[%c0_29, %c0_30, %c0_31, %c0_32] : memref<1x2x1x256xf32, #tpu.memory_space<vmem>>, vector<1x1x1x256xf32>
    %21 = vector.shape_cast %20 : vector<1x1x1x256xf32> to vector<1x256xf32>
    %22 = arith.truncf %3 : vector<8x256xf32> to vector<8x256xbf16>
    %cst = arith.constant dense<0.000000e+00> : vector<8x256xf32>
    %23 = tpu.matmul %22, %13, %cst {dimension_numbers = #tpu.dot_dimension_numbers<[1], [0], [0], [1], [0, 0, 1, 1], [], []>} : vector<8x256xbf16>, vector<256x256xbf16>, vector<8x256xf32> -> vector<8x256xf32>
    %cst_33 = arith.constant dense<0.000000e+00> : vector<8x1xf32>
    %24 = tpu.matmul %3, %15, %cst_33 {dimension_numbers = #tpu.dot_dimension_numbers<[1], [0], [0], [1], [0, 0, 1, 1], [], []>} : vector<8x256xf32>, vector<256x1xf32>, vector<8x1xf32> -> vector<8x1xf32>
    %cst_34 = arith.constant dense<0.000000e+00> : vector<8x1xf32>
    %25 = tpu.matmul %4, %17, %cst_34 {dimension_numbers = #tpu.dot_dimension_numbers<[1], [0], [0], [1], [0, 0, 1, 1], [], []>} : vector<8x256xf32>, vector<256x1xf32>, vector<8x1xf32> -> vector<8x1xf32>
    %cst_35 = arith.constant dense<0.000000e+00> : vector<16x1xf32>
    %26 = tpu.matmul %8, %19, %cst_35 {dimension_numbers = #tpu.dot_dimension_numbers<[1], [0], [0], [1], [0, 0, 1, 1], [], []>} : vector<16x2xf32>, vector<2x1xf32>, vector<16x1xf32> -> vector<16x1xf32>
    %27 = arith.extf %9 : vector<16x8xbf16> to vector<16x8xf32>
    %28 = arith.extf %10 : vector<16x8xbf16> to vector<16x8xf32>
    %29 = arith.truncf %23 : vector<8x256xf32> to vector<8x256xbf16>
    %cst_36 = arith.constant dense<0.000000e+00> : vector<16x256xf32>
    %30 = tpu.matmul %9, %29, %cst_36 {dimension_numbers = #tpu.dot_dimension_numbers<[1], [0], [0], [1], [0, 0, 1, 1], [], []>} : vector<16x8xbf16>, vector<8x256xbf16>, vector<16x256xf32> -> vector<16x256xf32>
    %cst_37 = arith.constant dense<0.000000e+00> : vector<16x1xf32>
    %31 = tpu.matmul %27, %24, %cst_37 {dimension_numbers = #tpu.dot_dimension_numbers<[1], [0], [0], [1], [0, 0, 1, 1], [], []>} : vector<16x8xf32>, vector<8x1xf32>, vector<16x1xf32> -> vector<16x1xf32>
    %cst_38 = arith.constant dense<0.000000e+00> : vector<16x1xf32>
    %32 = tpu.matmul %28, %25, %cst_38 {dimension_numbers = #tpu.dot_dimension_numbers<[1], [0], [0], [1], [0, 0, 1, 1], [], []>} : vector<16x8xf32>, vector<8x1xf32>, vector<16x1xf32> -> vector<16x1xf32>
    %33 = arith.addf %31, %32 : vector<16x1xf32>
    %34 = arith.addf %33, %26 : vector<16x1xf32>
    %cst_39 = arith.constant 0.000000e+00 : f32
    %35 = vector.broadcast %cst_39 : f32 to vector<16x1xf32>
    %36 = arith.cmpf ogt, %34, %35 : vector<16x1xf32>
    %cst_40 = arith.constant 2.000000e-01 : f32
    %37 = vector.broadcast %cst_40 : f32 to vector<16x1xf32>
    %38 = arith.mulf %37, %34 : vector<16x1xf32>
    %39 = arith.select %36, %34, %38 : vector<16x1xi1>, vector<16x1xf32>
    %cst_41 = arith.constant 0.000000e+00 : f32
    %40 = vector.broadcast %cst_41 : f32 to vector<16x8xf32>
    %41 = arith.cmpf ogt, %28, %40 : vector<16x8xf32>
    %cst_42 = arith.constant -1.000000e+30 : f32
    %42 = vector.shape_cast %39 : vector<16x1xf32> to vector<16x1xf32>
    %43 = vector.broadcast %42 : vector<16x1xf32> to vector<16x8xf32>
    %44 = vector.broadcast %cst_42 : f32 to vector<16x8xf32>
    %45 = arith.select %41, %43, %44 : vector<16x8xi1>, vector<16x8xf32>
    %cst_43 = arith.constant dense<0xFF800000> : vector<8xf32>
    %46 = vector.multi_reduction <maximumf>, %45, %cst_43 [0] : vector<16x8xf32> to vector<8xf32>
    %47 = vector.shape_cast %46 : vector<8xf32> to vector<1x8xf32>
    %48 = vector.broadcast %47 : vector<1x8xf32> to vector<16x8xf32>
    %49 = arith.mulf %28, %48 : vector<16x8xf32>
    %cst_44 = arith.constant dense<0.000000e+00> : vector<16xf32>
    %50 = vector.multi_reduction <add>, %49, %cst_44 [1] : vector<16x8xf32> to vector<16xf32>
    %51 = vector.shape_cast %50 : vector<16xf32> to vector<16x1xf32>
    %52 = arith.subf %39, %51 : vector<16x1xf32>
    %53 = math.exp %52 : vector<16x1xf32>
    %54 = vector.broadcast %53 : vector<16x1xf32> to vector<16x256xf32>
    %55 = arith.mulf %30, %54 : vector<16x256xf32>
    %56 = arith.truncf %55 : vector<16x256xf32> to vector<16x256xbf16>
    %cst_45 = arith.constant dense<0.000000e+00> : vector<8x256xf32>
    %57 = tpu.matmul %11, %56, %cst_45 {dimension_numbers = #tpu.dot_dimension_numbers<[1], [0], [0], [1], [0, 0, 1, 1], [], []>} : vector<8x16xbf16>, vector<16x256xbf16>, vector<8x256xf32> -> vector<8x256xf32>
    %58 = arith.extf %11 : vector<8x16xbf16> to vector<8x16xf32>
    %cst_46 = arith.constant dense<0.000000e+00> : vector<8x1xf32>
    %59 = tpu.matmul %58, %53, %cst_46 {dimension_numbers = #tpu.dot_dimension_numbers<[1], [0], [0], [1], [0, 0, 1, 1], [], []>} : vector<8x16xf32>, vector<16x1xf32>, vector<8x1xf32> -> vector<8x1xf32>
    %cst_47 = arith.constant 1.000000e-16 : f32
    %60 = vector.broadcast %cst_47 : f32 to vector<8x1xf32>
    %61 = arith.addf %59, %60 : vector<8x1xf32>
    %62 = tpu.reciprocal %61 {approx = true} : vector<8x1xf32> -> vector<8x1xf32>
    %63 = vector.broadcast %62 : vector<8x1xf32> to vector<8x256xf32>
    %64 = arith.mulf %57, %63 : vector<8x256xf32>
    %65 = vector.broadcast %21 : vector<1x256xf32> to vector<8x256xf32>
    %66 = arith.addf %64, %65 : vector<8x256xf32>
    %c0_48 = arith.constant 0 : index
    %c0_49 = arith.constant 0 : index
    %67 = vector.load %arg4[%c0_48, %c0_49] : memref<16x2xf32, #tpu.memory_space<vmem>>, vector<16x2xf32>
    %c0_50 = arith.constant 0 : index
    %c0_51 = arith.constant 0 : index
    %68 = vector.load %arg8[%c0_50, %c0_51] : memref<16x8xbf16, #tpu.memory_space<vmem>>, vector<16x8xbf16>
    %c0_52 = arith.constant 0 : index
    %c0_53 = arith.constant 0 : index
    %69 = vector.load %arg9[%c0_52, %c0_53] : memref<16x8xbf16, #tpu.memory_space<vmem>>, vector<16x8xbf16>
    %c0_54 = arith.constant 0 : index
    %c0_55 = arith.constant 0 : index
    %70 = vector.load %arg10[%c0_54, %c0_55] : memref<8x16xbf16, #tpu.memory_space<vmem>>, vector<8x16xbf16>
    %c0_56 = arith.constant 0 : index
    %c1 = arith.constant 1 : index
    %c0_57 = arith.constant 0 : index
    %c0_58 = arith.constant 0 : index
    %71 = vector.load %arg11[%c0_56, %c1, %c0_57, %c0_58] : memref<1x2x256x256xbf16, #tpu.memory_space<vmem>>, vector<1x1x256x256xbf16>
    %72 = vector.shape_cast %71 : vector<1x1x256x256xbf16> to vector<256x256xbf16>
    %c0_59 = arith.constant 0 : index
    %c1_60 = arith.constant 1 : index
    %c0_61 = arith.constant 0 : index
    %c0_62 = arith.constant 0 : index
    %73 = vector.load %arg12[%c0_59, %c1_60, %c0_61, %c0_62] : memref<1x2x256x1xf32, #tpu.memory_space<vmem>>, vector<1x1x256x1xf32>
    %74 = vector.shape_cast %73 : vector<1x1x256x1xf32> to vector<256x1xf32>
    %c0_63 = arith.constant 0 : index
    %c1_64 = arith.constant 1 : index
    %c0_65 = arith.constant 0 : index
    %c0_66 = arith.constant 0 : index
    %75 = vector.load %arg13[%c0_63, %c1_64, %c0_65, %c0_66] : memref<1x2x256x1xf32, #tpu.memory_space<vmem>>, vector<1x1x256x1xf32>
    %76 = vector.shape_cast %75 : vector<1x1x256x1xf32> to vector<256x1xf32>
    %c0_67 = arith.constant 0 : index
    %c1_68 = arith.constant 1 : index
    %c0_69 = arith.constant 0 : index
    %c0_70 = arith.constant 0 : index
    %77 = vector.load %arg14[%c0_67, %c1_68, %c0_69, %c0_70] : memref<1x2x2x1xf32, #tpu.memory_space<vmem>>, vector<1x1x2x1xf32>
    %78 = vector.shape_cast %77 : vector<1x1x2x1xf32> to vector<2x1xf32>
    %c0_71 = arith.constant 0 : index
    %c1_72 = arith.constant 1 : index
    %c0_73 = arith.constant 0 : index
    %c0_74 = arith.constant 0 : index
    %79 = vector.load %arg15[%c0_71, %c1_72, %c0_73, %c0_74] : memref<1x2x1x256xf32, #tpu.memory_space<vmem>>, vector<1x1x1x256xf32>
    %80 = vector.shape_cast %79 : vector<1x1x1x256xf32> to vector<1x256xf32>
    %81 = arith.truncf %4 : vector<8x256xf32> to vector<8x256xbf16>
    %cst_75 = arith.constant dense<0.000000e+00> : vector<8x256xf32>
    %82 = tpu.matmul %81, %72, %cst_75 {dimension_numbers = #tpu.dot_dimension_numbers<[1], [0], [0], [1], [0, 0, 1, 1], [], []>} : vector<8x256xbf16>, vector<256x256xbf16>, vector<8x256xf32> -> vector<8x256xf32>
    %cst_76 = arith.constant dense<0.000000e+00> : vector<8x1xf32>
    %83 = tpu.matmul %4, %74, %cst_76 {dimension_numbers = #tpu.dot_dimension_numbers<[1], [0], [0], [1], [0, 0, 1, 1], [], []>} : vector<8x256xf32>, vector<256x1xf32>, vector<8x1xf32> -> vector<8x1xf32>
    %cst_77 = arith.constant dense<0.000000e+00> : vector<8x1xf32>
    %84 = tpu.matmul %3, %76, %cst_77 {dimension_numbers = #tpu.dot_dimension_numbers<[1], [0], [0], [1], [0, 0, 1, 1], [], []>} : vector<8x256xf32>, vector<256x1xf32>, vector<8x1xf32> -> vector<8x1xf32>
    %cst_78 = arith.constant dense<0.000000e+00> : vector<16x1xf32>
    %85 = tpu.matmul %67, %78, %cst_78 {dimension_numbers = #tpu.dot_dimension_numbers<[1], [0], [0], [1], [0, 0, 1, 1], [], []>} : vector<16x2xf32>, vector<2x1xf32>, vector<16x1xf32> -> vector<16x1xf32>
    %86 = arith.extf %68 : vector<16x8xbf16> to vector<16x8xf32>
    %87 = arith.extf %69 : vector<16x8xbf16> to vector<16x8xf32>
    %88 = arith.truncf %82 : vector<8x256xf32> to vector<8x256xbf16>
    %cst_79 = arith.constant dense<0.000000e+00> : vector<16x256xf32>
    %89 = tpu.matmul %68, %88, %cst_79 {dimension_numbers = #tpu.dot_dimension_numbers<[1], [0], [0], [1], [0, 0, 1, 1], [], []>} : vector<16x8xbf16>, vector<8x256xbf16>, vector<16x256xf32> -> vector<16x256xf32>
    %cst_80 = arith.constant dense<0.000000e+00> : vector<16x1xf32>
    %90 = tpu.matmul %86, %83, %cst_80 {dimension_numbers = #tpu.dot_dimension_numbers<[1], [0], [0], [1], [0, 0, 1, 1], [], []>} : vector<16x8xf32>, vector<8x1xf32>, vector<16x1xf32> -> vector<16x1xf32>
    %cst_81 = arith.constant dense<0.000000e+00> : vector<16x1xf32>
    %91 = tpu.matmul %87, %84, %cst_81 {dimension_numbers = #tpu.dot_dimension_numbers<[1], [0], [0], [1], [0, 0, 1, 1], [], []>} : vector<16x8xf32>, vector<8x1xf32>, vector<16x1xf32> -> vector<16x1xf32>
    %92 = arith.addf %90, %91 : vector<16x1xf32>
    %93 = arith.addf %92, %85 : vector<16x1xf32>
    %cst_82 = arith.constant 0.000000e+00 : f32
    %94 = vector.broadcast %cst_82 : f32 to vector<16x1xf32>
    %95 = arith.cmpf ogt, %93, %94 : vector<16x1xf32>
    %cst_83 = arith.constant 2.000000e-01 : f32
    %96 = vector.broadcast %cst_83 : f32 to vector<16x1xf32>
    %97 = arith.mulf %96, %93 : vector<16x1xf32>
    %98 = arith.select %95, %93, %97 : vector<16x1xi1>, vector<16x1xf32>
    %cst_84 = arith.constant 0.000000e+00 : f32
    %99 = vector.broadcast %cst_84 : f32 to vector<16x8xf32>
    %100 = arith.cmpf ogt, %87, %99 : vector<16x8xf32>
    %cst_85 = arith.constant -1.000000e+30 : f32
    %101 = vector.shape_cast %98 : vector<16x1xf32> to vector<16x1xf32>
    %102 = vector.broadcast %101 : vector<16x1xf32> to vector<16x8xf32>
    %103 = vector.broadcast %cst_85 : f32 to vector<16x8xf32>
    %104 = arith.select %100, %102, %103 : vector<16x8xi1>, vector<16x8xf32>
    %cst_86 = arith.constant dense<0xFF800000> : vector<8xf32>
    %105 = vector.multi_reduction <maximumf>, %104, %cst_86 [0] : vector<16x8xf32> to vector<8xf32>
    %106 = vector.shape_cast %105 : vector<8xf32> to vector<1x8xf32>
    %107 = vector.broadcast %106 : vector<1x8xf32> to vector<16x8xf32>
    %108 = arith.mulf %87, %107 : vector<16x8xf32>
    %cst_87 = arith.constant dense<0.000000e+00> : vector<16xf32>
    %109 = vector.multi_reduction <add>, %108, %cst_87 [1] : vector<16x8xf32> to vector<16xf32>
    %110 = vector.shape_cast %109 : vector<16xf32> to vector<16x1xf32>
    %111 = arith.subf %98, %110 : vector<16x1xf32>
    %112 = math.exp %111 : vector<16x1xf32>
    %113 = vector.broadcast %112 : vector<16x1xf32> to vector<16x256xf32>
    %114 = arith.mulf %89, %113 : vector<16x256xf32>
    %115 = arith.truncf %114 : vector<16x256xf32> to vector<16x256xbf16>
    %cst_88 = arith.constant dense<0.000000e+00> : vector<8x256xf32>
    %116 = tpu.matmul %70, %115, %cst_88 {dimension_numbers = #tpu.dot_dimension_numbers<[1], [0], [0], [1], [0, 0, 1, 1], [], []>} : vector<8x16xbf16>, vector<16x256xbf16>, vector<8x256xf32> -> vector<8x256xf32>
    %117 = arith.extf %70 : vector<8x16xbf16> to vector<8x16xf32>
    %cst_89 = arith.constant dense<0.000000e+00> : vector<8x1xf32>
    %118 = tpu.matmul %117, %112, %cst_89 {dimension_numbers = #tpu.dot_dimension_numbers<[1], [0], [0], [1], [0, 0, 1, 1], [], []>} : vector<8x16xf32>, vector<16x1xf32>, vector<8x1xf32> -> vector<8x1xf32>
    %cst_90 = arith.constant 1.000000e-16 : f32
    %119 = vector.broadcast %cst_90 : f32 to vector<8x1xf32>
    %120 = arith.addf %118, %119 : vector<8x1xf32>
    %121 = tpu.reciprocal %120 {approx = true} : vector<8x1xf32> -> vector<8x1xf32>
    %122 = vector.broadcast %121 : vector<8x1xf32> to vector<8x256xf32>
    %123 = arith.mulf %116, %122 : vector<8x256xf32>
    %124 = vector.broadcast %80 : vector<1x256xf32> to vector<8x256xf32>
    %125 = arith.addf %123, %124 : vector<8x256xf32>
    %cst_91 = arith.constant 0.000000e+00 : f32
    %126 = vector.broadcast %cst_91 : f32 to vector<8x256xf32>
    %127 = arith.maximumf %125, %126 : vector<8x256xf32>
    %128 = vector.broadcast %7 : f32 to vector<8x256xf32>
    %129 = arith.mulf %128, %3 : vector<8x256xf32>
    %130 = arith.addf %127, %129 : vector<8x256xf32>
    %cst_92 = arith.constant 0.000000e+00 : f32
    %131 = vector.broadcast %cst_92 : f32 to vector<8x256xf32>
    %132 = arith.maximumf %66, %131 : vector<8x256xf32>
    %133 = vector.broadcast %7 : f32 to vector<8x256xf32>
    %134 = arith.mulf %133, %4 : vector<8x256xf32>
    %135 = arith.addf %132, %134 : vector<8x256xf32>
    %c0_93 = arith.constant 0 : index
    %c0_94 = arith.constant 0 : index
    %136 = vector.load %arg27[%c0_93, %c0_94] : memref<8x256xf32, #tpu.memory_space<vmem>>, vector<8x256xf32>
    tpu.vector_store %arg27[%c0_93, %c0_94], %130 {strides = array<i32>} : memref<8x256xf32, #tpu.memory_space<vmem>>, vector<8x256xf32>,
    %c0_95 = arith.constant 0 : index
    %c0_96 = arith.constant 0 : index
    %137 = vector.load %arg28[%c0_95, %c0_96] : memref<8x256xf32, #tpu.memory_space<vmem>>, vector<8x256xf32>
    tpu.vector_store %arg28[%c0_95, %c0_96], %135 {strides = array<i32>} : memref<8x256xf32, #tpu.memory_space<vmem>>, vector<8x256xf32>,
    %c7_i32 = arith.constant 7 : i32
    %138 = arith.cmpi eq, %arg0, %c7_i32 : i32
    %139 = arith.extui %138 : i1 to i32
    %c0_i32_97 = arith.constant 0 : i32
    %140 = arith.cmpi ne, %139, %c0_i32_97 : i32
    scf.if %140 {
      %c0_98 = arith.constant 0 : index
      %c0_99 = arith.constant 0 : index
      %141 = vector.load %arg16[%c0_98, %c0_99] : memref<2x8xf32, #tpu.memory_space<vmem>>, vector<2x8xf32>
      %cst_100 = arith.constant dense<0.000000e+00> : vector<2x256xf32>
      %142 = tpu.matmul %141, %130, %cst_100 {dimension_numbers = #tpu.dot_dimension_numbers<[1], [0], [0], [1], [0, 0, 1, 1], [], []>} : vector<2x8xf32>, vector<8x256xf32>, vector<2x256xf32> -> vector<2x256xf32>
      %c0_101 = arith.constant 0 : index
      %c0_102 = arith.constant 0 : index
      %143 = vector.load %arg17[%c0_101, %c0_102] : memref<2x8xf32, #tpu.memory_space<vmem>>, vector<2x8xf32>
      %cst_103 = arith.constant dense<0.000000e+00> : vector<2x256xf32>
      %144 = tpu.matmul %143, %135, %cst_103 {dimension_numbers = #tpu.dot_dimension_numbers<[1], [0], [0], [1], [0, 0, 1, 1], [], []>} : vector<2x8xf32>, vector<8x256xf32>, vector<2x256xf32> -> vector<2x256xf32>
      %c0_104 = arith.constant 0 : index
      %c0_105 = arith.constant 0 : index
      %145 = vector.load %arg19[%c0_104, %c0_105] : memref<2x2xf32, #tpu.memory_space<vmem>>, vector<2x2xf32>
      %cst_106 = arith.constant dense<0.000000e+00> : vector<2x256xf32>
      %146 = tpu.matmul %145, %142, %cst_106 {dimension_numbers = #tpu.dot_dimension_numbers<[1], [0], [0], [1], [0, 0, 1, 1], [], []>} : vector<2x2xf32>, vector<2x256xf32>, vector<2x256xf32> -> vector<2x256xf32>
      %c0_107 = arith.constant 0 : index
      %c0_108 = arith.constant 0 : index
      %147 = vector.load %arg19[%c0_107, %c0_108] : memref<2x2xf32, #tpu.memory_space<vmem>>, vector<2x2xf32>
      %cst_109 = arith.constant dense<0.000000e+00> : vector<2x256xf32>
      %148 = tpu.matmul %147, %144, %cst_109 {dimension_numbers = #tpu.dot_dimension_numbers<[1], [0], [0], [1], [0, 0, 1, 1], [], []>} : vector<2x2xf32>, vector<2x256xf32>, vector<2x256xf32> -> vector<2x256xf32>
      %c0_110 = arith.constant 0 : index
      %c0_111 = arith.constant 0 : index
      %149 = vector.load %arg3[%c0_110, %c0_111] : memref<16x2xf32, #tpu.memory_space<vmem>>, vector<16x2xf32>
      %c0_112 = arith.constant 0 : index
      %c0_113 = arith.constant 0 : index
      %150 = vector.load %arg20[%c0_112, %c0_113] : memref<2x32xf32, #tpu.memory_space<vmem>>, vector<2x32xf32>
      %cst_114 = arith.constant dense<0.000000e+00> : vector<16x32xf32>
      %151 = tpu.matmul %149, %150, %cst_114 {dimension_numbers = #tpu.dot_dimension_numbers<[1], [0], [0], [1], [0, 0, 1, 1], [], []>} : vector<16x2xf32>, vector<2x32xf32>, vector<16x32xf32> -> vector<16x32xf32>
      %c0_115 = arith.constant 0 : index
      %c0_116 = arith.constant 0 : index
      %152 = vector.load %arg21[%c0_115, %c0_116] : memref<1x32xf32, #tpu.memory_space<vmem>>, vector<1x32xf32>
      %153 = vector.broadcast %152 : vector<1x32xf32> to vector<16x32xf32>
      %154 = arith.addf %151, %153 : vector<16x32xf32>
      %cst_117 = arith.constant 0.000000e+00 : f32
      %155 = vector.broadcast %cst_117 : f32 to vector<16x32xf32>
      %156 = arith.maximumf %154, %155 : vector<16x32xf32>
      %c0_118 = arith.constant 0 : index
      %c0_119 = arith.constant 0 : index
      %157 = vector.load %arg18[%c0_118, %c0_119] : memref<2x16xf32, #tpu.memory_space<vmem>>, vector<2x16xf32>
      %cst_120 = arith.constant dense<0.000000e+00> : vector<2x32xf32>
      %158 = tpu.matmul %157, %156, %cst_120 {dimension_numbers = #tpu.dot_dimension_numbers<[1], [0], [0], [1], [0, 0, 1, 1], [], []>} : vector<2x16xf32>, vector<16x32xf32>, vector<2x32xf32> -> vector<2x32xf32>
      %c0_121 = arith.constant 0 : index
      %c0_122 = arith.constant 0 : index
      %159 = vector.load %arg22[%c0_121, %c0_122] : memref<256x10xf32, #tpu.memory_space<vmem>>, vector<256x10xf32>
      %cst_123 = arith.constant dense<0.000000e+00> : vector<2x10xf32>
      %160 = tpu.matmul %146, %159, %cst_123 {dimension_numbers = #tpu.dot_dimension_numbers<[1], [0], [0], [1], [0, 0, 1, 1], [], []>} : vector<2x256xf32>, vector<256x10xf32>, vector<2x10xf32> -> vector<2x10xf32>
      %c0_124 = arith.constant 0 : index
      %c0_125 = arith.constant 0 : index
      %161 = vector.load %arg23[%c0_124, %c0_125] : memref<256x10xf32, #tpu.memory_space<vmem>>, vector<256x10xf32>
      %cst_126 = arith.constant dense<0.000000e+00> : vector<2x10xf32>
      %162 = tpu.matmul %148, %161, %cst_126 {dimension_numbers = #tpu.dot_dimension_numbers<[1], [0], [0], [1], [0, 0, 1, 1], [], []>} : vector<2x256xf32>, vector<256x10xf32>, vector<2x10xf32> -> vector<2x10xf32>
      %163 = arith.addf %160, %162 : vector<2x10xf32>
      %c0_127 = arith.constant 0 : index
      %c0_128 = arith.constant 0 : index
      %164 = vector.load %arg24[%c0_127, %c0_128] : memref<32x10xf32, #tpu.memory_space<vmem>>, vector<32x10xf32>
      %cst_129 = arith.constant dense<0.000000e+00> : vector<2x10xf32>
      %165 = tpu.matmul %158, %164, %cst_129 {dimension_numbers = #tpu.dot_dimension_numbers<[1], [0], [0], [1], [0, 0, 1, 1], [], []>} : vector<2x32xf32>, vector<32x10xf32>, vector<2x10xf32> -> vector<2x10xf32>
      %166 = arith.addf %163, %165 : vector<2x10xf32>
      %c0_130 = arith.constant 0 : index
      %c0_131 = arith.constant 0 : index
      %167 = vector.load %arg25[%c0_130, %c0_131] : memref<1x10xf32, #tpu.memory_space<vmem>>, vector<1x10xf32>
      %168 = vector.broadcast %167 : vector<1x10xf32> to vector<2x10xf32>
      %169 = arith.addf %166, %168 : vector<2x10xf32>
      %170 = vector.extract_strided_slice %169 {offsets = [0, 0], sizes = [2, 5], strides = [1, 1]} : vector<2x10xf32> to vector<2x5xf32>
      %cst_132 = arith.constant dense<0xFF800000> : vector<2xf32>
      %171 = vector.multi_reduction <maximumf>, %170, %cst_132 [1] : vector<2x5xf32> to vector<2xf32>
      %172 = vector.shape_cast %171 : vector<2xf32> to vector<2x1xf32>
      %173 = vector.broadcast %172 : vector<2x1xf32> to vector<2x5xf32>
      %174 = arith.subf %170, %173 : vector<2x5xf32>
      %175 = math.exp %174 : vector<2x5xf32>
      %cst_133 = arith.constant dense<0.000000e+00> : vector<2xf32>
      %176 = vector.multi_reduction <add>, %175, %cst_133 [1] : vector<2x5xf32> to vector<2xf32>
      %177 = vector.shape_cast %176 : vector<2xf32> to vector<2x1xf32>
      %178 = tpu.reciprocal %177 {approx = true} : vector<2x1xf32> -> vector<2x1xf32>
      %179 = vector.broadcast %178 : vector<2x1xf32> to vector<2x5xf32>
      %180 = arith.mulf %175, %179 : vector<2x5xf32>
      %181 = vector.extract_strided_slice %169 {offsets = [0, 5], sizes = [2, 5], strides = [1, 1]} : vector<2x10xf32> to vector<2x5xf32>
      %cst_134 = arith.constant dense<0xFF800000> : vector<2xf32>
      %182 = vector.multi_reduction <maximumf>, %181, %cst_134 [1] : vector<2x5xf32> to vector<2xf32>
      %183 = vector.shape_cast %182 : vector<2xf32> to vector<2x1xf32>
      %184 = vector.broadcast %183 : vector<2x1xf32> to vector<2x5xf32>
      %185 = arith.subf %181, %184 : vector<2x5xf32>
      %186 = math.exp %185 : vector<2x5xf32>
      %cst_135 = arith.constant dense<0.000000e+00> : vector<2xf32>
      %187 = vector.multi_reduction <add>, %186, %cst_135 [1] : vector<2x5xf32> to vector<2xf32>
      %188 = vector.shape_cast %187 : vector<2xf32> to vector<2x1xf32>
      %189 = tpu.reciprocal %188 {approx = true} : vector<2x1xf32> -> vector<2x1xf32>
      %190 = vector.broadcast %189 : vector<2x1xf32> to vector<2x5xf32>
      %191 = arith.mulf %186, %190 : vector<2x5xf32>
      %192 = tpu.concatenate %180, %191 in 1 : vector<2x5xf32>, vector<2x5xf32> -> vector<2x10xf32>
      %c0_136 = arith.constant 0 : index
      %c0_137 = arith.constant 0 : index
      %193 = vector.load %arg26[%c0_136, %c0_137] : memref<2x10xf32, #tpu.memory_space<vmem>>, vector<2x10xf32>
      tpu.vector_store %arg26[%c0_136, %c0_137], %192 {strides = array<i32>} : memref<2x10xf32, #tpu.memory_space<vmem>>, vector<2x10xf32>,
    } else {
    }
    return
  }
  func.func @transform_0(%arg0: i32) -> (i32, i32) {
    %c0_i32 = arith.constant 0 : i32
    %c0_i32_0 = arith.constant 0 : i32
    %c0_i32_1 = arith.constant 0 : i32
    return %c0_i32, %c0_i32_0 : i32, i32
  }
  func.func @transform_1(%arg0: i32) -> (i32, i32) {
    %c0_i32 = arith.constant 0 : i32
    %c0_i32_0 = arith.constant 0 : i32
    %c0_i32_1 = arith.constant 0 : i32
    return %c0_i32, %c0_i32_0 : i32, i32
  }
  func.func @transform_2(%arg0: i32) -> (i32, i32) {
    %c0_i32 = arith.constant 0 : i32
    %c0_i32_0 = arith.constant 0 : i32
    %c0_i32_1 = arith.constant 0 : i32
    return %c0_i32, %c0_i32_0 : i32, i32
  }
  func.func @transform_3(%arg0: i32) -> (i32, i32) {
    %c0_i32 = arith.constant 0 : i32
    %c0_i32_0 = arith.constant 0 : i32
    %c0_i32_1 = arith.constant 0 : i32
    return %c0_i32, %c0_i32_0 : i32, i32
  }
  func.func @transform_4(%arg0: i32) -> (i32, i32) {
    %c0_i32 = arith.constant 0 : i32
    %c0_i32_0 = arith.constant 0 : i32
    %c0_i32_1 = arith.constant 0 : i32
    return %c0_i32, %c0_i32_0 : i32, i32
  }
  func.func @transform_5(%arg0: i32) -> (i32, i32) {
    %c0_i32 = arith.constant 0 : i32
    %c0_i32_0 = arith.constant 0 : i32
    %c0_i32_1 = arith.constant 0 : i32
    return %c0_i32, %c0_i32_0 : i32, i32
  }
  func.func @transform_6(%arg0: i32) -> (i32, i32) {
    %c0_i32 = arith.constant 0 : i32
    %c0_i32_0 = arith.constant 0 : i32
    %c0_i32_1 = arith.constant 0 : i32
    return %c0_i32, %c0_i32_0 : i32, i32
  }
  func.func @transform_7(%arg0: i32) -> (i32, i32) {
    %c0_i32 = arith.constant 0 : i32
    %c0_i32_0 = arith.constant 0 : i32
    %c0_i32_1 = arith.constant 0 : i32
    return %c0_i32, %c0_i32_0 : i32, i32
  }
  func.func @transform_8(%arg0: i32) -> (i32, i32) {
    %c0_i32 = arith.constant 0 : i32
    %c0_i32_0 = arith.constant 0 : i32
    %c0_i32_1 = arith.constant 0 : i32
    return %c0_i32, %c0_i32_0 : i32, i32
  }
  func.func @transform_9(%arg0: i32) -> (i32, i32) {
    %c0_i32 = arith.constant 0 : i32
    %c0_i32_0 = arith.constant 0 : i32
    %c0_i32_1 = arith.constant 0 : i32
    return %c0_i32, %c0_i32_0 : i32, i32
  }
  func.func @transform_10(%arg0: i32) -> (i32, i32, i32, i32) {
    %c0_i32 = arith.constant 0 : i32
    %c0_i32_0 = arith.constant 0 : i32
    %c0_i32_1 = arith.constant 0 : i32
    %c0_i32_2 = arith.constant 0 : i32
    return %arg0, %c0_i32, %c0_i32_0, %c0_i32_1 : i32, i32, i32, i32
  }
  func.func @transform_11(%arg0: i32) -> (i32, i32, i32, i32) {
    %c0_i32 = arith.constant 0 : i32
    %c0_i32_0 = arith.constant 0 : i32
    %c0_i32_1 = arith.constant 0 : i32
    %c0_i32_2 = arith.constant 0 : i32
    return %arg0, %c0_i32, %c0_i32_0, %c0_i32_1 : i32, i32, i32, i32
  }
  func.func @transform_12(%arg0: i32) -> (i32, i32, i32, i32) {
    %c0_i32 = arith.constant 0 : i32
    %c0_i32_0 = arith.constant 0 : i32
    %c0_i32_1 = arith.constant 0 : i32
    %c0_i32_2 = arith.constant 0 : i32
    return %arg0, %c0_i32, %c0_i32_0, %c0_i32_1 : i32, i32, i32, i32
  }
  func.func @transform_13(%arg0: i32) -> (i32, i32, i32, i32) {
    %c0_i32 = arith.constant 0 : i32
    %c0_i32_0 = arith.constant 0 : i32
    %c0_i32_1 = arith.constant 0 : i32
    %c0_i32_2 = arith.constant 0 : i32
    return %arg0, %c0_i32, %c0_i32_0, %c0_i32_1 : i32, i32, i32, i32
  }
  func.func @transform_14(%arg0: i32) -> (i32, i32, i32, i32) {
    %c0_i32 = arith.constant 0 : i32
    %c0_i32_0 = arith.constant 0 : i32
    %c0_i32_1 = arith.constant 0 : i32
    %c0_i32_2 = arith.constant 0 : i32
    return %arg0, %c0_i32, %c0_i32_0, %c0_i32_1 : i32, i32, i32, i32
  }
  func.func @transform_15(%arg0: i32) -> (i32, i32) {
    %c0_i32 = arith.constant 0 : i32
    %c0_i32_0 = arith.constant 0 : i32
    %c0_i32_1 = arith.constant 0 : i32
    return %c0_i32, %c0_i32_0 : i32, i32
  }
  func.func @transform_16(%arg0: i32) -> (i32, i32) {
    %c0_i32 = arith.constant 0 : i32
    %c0_i32_0 = arith.constant 0 : i32
    %c0_i32_1 = arith.constant 0 : i32
    return %c0_i32, %c0_i32_0 : i32, i32
  }
  func.func @transform_17(%arg0: i32) -> (i32, i32) {
    %c0_i32 = arith.constant 0 : i32
    %c0_i32_0 = arith.constant 0 : i32
    %c0_i32_1 = arith.constant 0 : i32
    return %c0_i32, %c0_i32_0 : i32, i32
  }
  func.func @transform_18(%arg0: i32) -> (i32, i32) {
    %c0_i32 = arith.constant 0 : i32
    %c0_i32_0 = arith.constant 0 : i32
    %c0_i32_1 = arith.constant 0 : i32
    return %c0_i32, %c0_i32_0 : i32, i32
  }
  func.func @transform_19(%arg0: i32) -> (i32, i32) {
    %c0_i32 = arith.constant 0 : i32
    %c0_i32_0 = arith.constant 0 : i32
    %c0_i32_1 = arith.constant 0 : i32
    return %c0_i32, %c0_i32_0 : i32, i32
  }
  func.func @transform_20(%arg0: i32) -> (i32, i32) {
    %c0_i32 = arith.constant 0 : i32
    %c0_i32_0 = arith.constant 0 : i32
    %c0_i32_1 = arith.constant 0 : i32
    return %c0_i32, %c0_i32_0 : i32, i32
  }
  func.func @transform_21(%arg0: i32) -> (i32, i32) {
    %c0_i32 = arith.constant 0 : i32
    %c0_i32_0 = arith.constant 0 : i32
    %c0_i32_1 = arith.constant 0 : i32
    return %c0_i32, %c0_i32_0 : i32, i32
  }
  func.func @transform_22(%arg0: i32) -> (i32, i32) {
    %c0_i32 = arith.constant 0 : i32
    %c0_i32_0 = arith.constant 0 : i32
    %c0_i32_1 = arith.constant 0 : i32
    return %c0_i32, %c0_i32_0 : i32, i32
  }
  func.func @transform_23(%arg0: i32) -> (i32, i32) {
    %c0_i32 = arith.constant 0 : i32
    %c0_i32_0 = arith.constant 0 : i32
    %c0_i32_1 = arith.constant 0 : i32
    return %c0_i32, %c0_i32_0 : i32, i32
  }
  func.func @transform_24(%arg0: i32) -> (i32, i32) {
    %c0_i32 = arith.constant 0 : i32
    %c0_i32_0 = arith.constant 0 : i32
    %c0_i32_1 = arith.constant 0 : i32
    return %c0_i32, %c0_i32_0 : i32, i32
  }
  func.func @transform_25(%arg0: i32) -> (i32, i32) {
    %c0_i32 = arith.constant 0 : i32
    %c0_i32_0 = arith.constant 0 : i32
    %c0_i32_1 = arith.constant 0 : i32
    return %c0_i32, %c0_i32_0 : i32, i32
  }
}

</mosaic_0001>

<bundles_post_ra>
// kernel: helpv3_forward.1
= control target key start
LH: loop header
LB: loop body
LE: loop exit
PB: predicated region body
PF: predicated region fallthrough
CT: control target
= control target key end

     0   :  { %s4714_s29 = smov 0   ;;  %s5377_s0 = inlined_call_operand.vmem [shape: f32[8,256], index: 0, kind: input, shape index: {}]   ;;  %s5378_s1 = inlined_call_operand.vmem [shape: f32[8,256], index: 1, kind: input, shape index: {}]   ;;  %s5379_s2 = inlined_call_operand.vmem [shape: f32[16,2], index: 2, kind: input, shape index: {}]   ;;  %s5380_s3 = inlined_call_operand.vmem [shape: f32[16,2], index: 3, kind: input, shape index: {}]   ;;  %s5381_s4 = inlined_call_operand.vmem [shape: bf16[16,8], index: 4, kind: input, shape index: {}]   ;;  %s5382_s5 = inlined_call_operand.vmem [shape: bf16[16,8], index: 5, kind: input, shape index: {}]   ;;  %s5383_s6 = inlined_call_operand.vmem [shape: bf16[8,16], index: 6, kind: input, shape index: {}]   ;;  %s5384_s7 = inlined_call_operand.vmem [shape: bf16[16,8], index: 7, kind: input, shape index: {}]   ;;  %s5385_s8 = inlined_call_operand.vmem [shape: bf16[16,8], index: 8, kind: input, shape index: {}]   ;;  %s5386_s9 = inlined_call_operand.vmem [shape: bf16[8,16], index: 9, kind: input, shape index: {}]   ;;  %s5387_s10 = inlined_call_operand.vmem [shape: bf16[8,2,256,256], index: 10, kind: input, shape index: {}]   ;;  %s5388_s11 = inlined_call_operand.vmem [shape: f32[8,2,256,1], index: 11, kind: input, shape index: {}]   ;;  %s5389_s12 = inlined_call_operand.vmem [shape: f32[8,2,256,1], index: 12, kind: input, shape index: {}]   ;;  %s5390_s13 = inlined_call_operand.vmem [shape: f32[8,2,2,1], index: 13, kind: input, shape index: {}]   ;;  %s5391_s14 = inlined_call_operand.vmem [shape: f32[8,2,1,256], index: 14, kind: input, shape index: {}]   ;;  %s5392_s15 = inlined_call_operand.vmem [shape: f32[2,8], index: 15, kind: input, shape index: {}]   ;;  %s5393_s16 = inlined_call_operand.vmem [shape: f32[2,8], index: 16, kind: input, shape index: {}]   ;;  %s5394_s17 = inlined_call_operand.vmem [shape: f32[2,16], index: 17, kind: input, shape index: {}]   ;;  %s5395_s18 = inlined_call_operand.vmem [shape: f32[2,2], index: 18, kind: input, shape index: {}]   ;;  %s5396_s19 = inlined_call_operand.vmem [shape: f32[2,32], index: 19, kind: input, shape index: {}]   ;;  %s5397_s20 = inlined_call_operand.vmem [shape: f32[1,32], index: 20, kind: input, shape index: {}]   ;;  %s5398_s21 = inlined_call_operand.vmem [shape: f32[256,10], index: 21, kind: input, shape index: {}]   ;;  %s5399_s22 = inlined_call_operand.vmem [shape: f32[256,10], index: 22, kind: input, shape index: {}]   ;;  %s5400_s23 = inlined_call_operand.vmem [shape: f32[32,10], index: 23, kind: input, shape index: {}]   ;;  %s5401_s24 = inlined_call_operand.vmem [shape: f32[1,10], index: 24, kind: input, shape index: {}]   ;;  %s5402_s25 = inlined_call_operand.vmem [shape: f32[2,10], index: 25, kind: output, shape index: {}]  }
   0x1   :  { %5409 = sst [smem:[#allocation5_spill]] %s5377_s0 }
   0x2   :  { %5410 = sst [smem:[#allocation6_spill]] %s5378_s1 }
   0x3   :  { %5411 = sst [smem:[#allocation7_spill]] %s5379_s2 }
   0x4   :  { %5412 = sst [smem:[#allocation8_spill]] %s5380_s3 }
   0x5   :  { %5413 = sst [smem:[#allocation9_spill]] %s5381_s4 }
   0x6   :  { %5414 = sst [smem:[#allocation10_spill]] %s5382_s5 }
   0x7   :  { %5415 = sst [smem:[#allocation11_spill]] %s5383_s6 }
   0x8   :  { %5416 = sst [smem:[#allocation12_spill]] %s5384_s7 }
   0x9   :  { %5417 = sst [smem:[#allocation13_spill]] %s5385_s8 }
   0xa   :  { %5418 = sst [smem:[#allocation14_spill]] %s5386_s9 }
   0xb   :  { %5419 = sst [smem:[#allocation15_spill]] %s5401_s24 }
   0xc   :  { %5420 = sst [smem:[#allocation16_spill]] %s5402_s25 }
   0xd LB: > { %5421 = sst [smem:[#allocation4_spill]] %s4574_s29  ;;  %s4720_s2 = sadd.s32 4294967295, %s4574_s29   ;;  %s4574_s29 = sphi %s4714_s29, %s35_s29  }
   0xe   : > { %p3672_p0 = scmp.ge.s32.totalorder %s4574_s29, 1  ;;  %p721_p1 = scmp.lt.s32.totalorder %s4574_s29, 9 }
  0x10   : > { %p722_p2 = pnand %p3672_p0, %p721_p1 }
  0x11   : > { %p803_p3 = scmp.lt.s32.totalorder (!%p722_p2), %s4720_s2, 7  ;;  %p3682_p4 = scmp.ne.s32.totalorder (!%p722_p2), %s4720_s2, 0 }
  0x12   : > { %725 = sbr.rel (%p722_p2) target bundleno = 3345 (0xd11), region = 120 }
  0x19   : > { %s804_s6 = scalar_select %p803_p3, %s4720_s2, 7 }
  0x1a   : > { %831 = sbr.rel (%p3682_p4) target bundleno = 38 (0x26), region = 124  ;;  %s5422_s27 = sld [smem:[#allocation5_spill]] (!%p3682_p4) }
  0x1b   : > { %s3887_s30 = sshll.u32 %s804_s6, 9  ;;  %s3890_s7 = sshll.u32 %s804_s6, 2 }
  0x1c   : > { %s4729_s1 = scalar_lea.vmem %s5387_s10, %s3887_s30  ;;  %s4734_s4 = scalar_lea.vmem %s5388_s11, %s3887_s30 }
  0x1d   : > { %s4739_s5 = scalar_lea.vmem %s5389_s12, %s3887_s30  ;;  %s4744_s25 = scalar_lea.vmem %s5390_s13, %s3890_s7 }
  0x1e   : > { %s4749_s3 = scalar_lea.vmem %s5391_s14, %s3890_s7  ;;  %s5423_s0 = sld [smem:[#allocation6_spill]] (!%p3682_p4) }
  0x20   : > { %v832_v0 = vld [vmem:[%s5422_s27] sm:$0xff] (!%p3682_p4)  ;;  %v833_v1 = vld [vmem:[%s5422_s27 + $0x8] sm:$0xff] (!%p3682_p4) }
  0x21   : > { %834 = vst [vmem:[#allocation2] sm:$0xff] %v832_v0  ;;  %835 = vst [vmem:[#allocation2 + $0x8] sm:$0xff] %v833_v1 }
  0x24   : > { %v836_v2 = vld [vmem:[%s5423_s0] sm:$0xff]  ;;  %v837_v3 = vld [vmem:[%s5423_s0 + $0x8] sm:$0xff] }
  0x25   : > { %838 = vst [vmem:[#allocation3] sm:$0xff] %v836_v2  ;;  %839 = vst [vmem:[#allocation3 + $0x8] sm:$0xff] %v837_v3 }
  0x26 PF: > { %v902_v4 = vld [vmem:[%s4734_s4 + $0x80] sm:$0xff]  ;;  %v903_v5 = vld [vmem:[%s4734_s4 + $0x88] sm:$0xff]  ;;  %v904_v9 = vld [vmem:[%s4734_s4 + $0x90] sm:$0xff]  ;;  %vm1302_vm0 = vcmask 1041408   ;;  %s5424_s8 = sld [smem:[#allocation7_spill]]  ;;  %vm1295_vm1 = vcmask 15360  }
  0x27   : > { %v886_v6 = vld [vmem:[%s4734_s4] sm:$0xff]  ;;  %v4211_v7 = vpack.c.bf16 %v903_v5, %v902_v4  ;;  %v887_v8 = vld [vmem:[%s4734_s4 + $0x8] sm:$0xff]  ;;  %v905_v10 = vld [vmem:[%s4734_s4 + $0x98] sm:$0xff]  ;;  %s5425_s24 = sld [smem:[#allocation10_spill]]  ;;  %vm1392_vm2 = vcmask 64512   ;;  %s5426_s26 = sld [smem:[#allocation9_spill]] }
  0x28   : > { %v4213_v11 = vpack.c.bf16 %v887_v8, %v886_v6  ;;  %v4215_v12 = vpack.c.bf16 %v905_v10, %v904_v9  ;;  %v888_v13 = vld [vmem:[%s4734_s4 + $0x10] sm:$0xff]  ;;  %v889_v14 = vld [vmem:[%s4734_s4 + $0x18] sm:$0xff]  ;;  %v906_v15 = vld [vmem:[%s4734_s4 + $0xa0] sm:$0xff]  ;;  %vm1396_vm5 = vcmask 1043456   ;;  %vm4578_vm8 = vmmov 0   ;;  %s5427_s30 = sld [smem:[#allocation11_spill]] }
  0x29   : > { %4212 = vmatprep.subr.bf16.mxu1 %v4211_v7  ;;  %v907_v16 = vld [vmem:[%s4734_s4 + $0xa8] sm:$0xff]  ;;  %v4217_v17 = vpack.c.bf16 %v889_v14, %v888_v13  ;;  %v890_v19 = vld [vmem:[%s4734_s4 + $0x20] sm:$0xff]  ;;  %v908_v21 = vld [vmem:[%s4734_s4 + $0xb0] sm:$0xff]  ;;  %vm1669_vm9 = vcmask 130048   ;;  %s5428_s29 = sld [smem:[#allocation8_spill]]  ;;  %s5432_s9 = sld [smem:[#allocation14_spill]] }
  0x2a   : > { %4214 = vmatpush3.bf16.msra.mxu1 %v4213_v11  ;;  %v4219_v18 = vpack.c.bf16 %v907_v16, %v906_v15  ;;  %v891_v20 = vld [vmem:[%s4734_s4 + $0x28] sm:$0xff]  ;;  %v909_v22 = vld [vmem:[%s4734_s4 + $0xb8] sm:$0xff]  ;;  %v892_v25 = vld [vmem:[%s4734_s4 + $0x30] sm:$0xff]  ;;  %p844_p5 = scmp.gt.s32.totalorder %s4720_s2, 0  ;;  %p3869_p6 = scmp.ne.s32.totalorder %s4720_s2, 7 }
  0x2b   : > { %4216 = vmatprep.subr.bf16.mxu1 %v4215_v12  ;;  %v4221_v23 = vpack.c.bf16 %v891_v20, %v890_v19  ;;  %v4223_v24 = vpack.c.bf16 %v909_v22, %v908_v21  ;;  %v893_v26 = vld [vmem:[%s4734_s4 + $0x38] sm:$0xff]  ;;  %v910_v27 = vld [vmem:[%s4734_s4 + $0xc0] sm:$0xff]  ;;  %v911_v28 = vld [vmem:[%s4734_s4 + $0xc8] sm:$0xff]  ;;  %vm4582_vm14 = vmmov (!%p3869_p6), 0   ;;  %vm3478_vm15 = vcmask (!%p3869_p6), 261120   ;;  %s5434_s6 = sld [smem:[#allocation15_spill]] (!%p3869_p6) }
  0x2c   : > { %v4782_v29 = vld [vmem:[#allocation2 + $0x8] sm:$0xff]  ;;  %v4225_v30 = vpack.c.bf16 %v893_v26, %v892_v25  ;;  %v4227_v31 = vpack.c.bf16 %v911_v28, %v910_v27  ;;  %v894_v32 = vld [vmem:[%s4734_s4 + $0x40] sm:$0xff]  ;;  %v912_v34 = vld [vmem:[%s4734_s4 + $0xd0] sm:$0xff] }
  0x2d   : > { %1219 = vmatprep.mubr.f32.mxu1 %v4782_v29  ;;  %v895_v33 = vld [vmem:[%s4734_s4 + $0x48] sm:$0xff]  ;;  %v913_v35 = vld [vmem:[%s4734_s4 + $0xd8] sm:$0xff]  ;;  %v896_v38 = vld [vmem:[%s4734_s4 + $0x50] sm:$0xff] }
  0x2e   : > { %4218 = vmatpush3.bf16.msra.mxu1 %v4217_v17  ;;  %v4229_v36 = vpack.c.bf16 %v895_v33, %v894_v32  ;;  %v4231_v37 = vpack.c.bf16 %v913_v35, %v912_v34  ;;  %v897_v39 = vld [vmem:[%s4734_s4 + $0x58] sm:$0xff]  ;;  %v914_v40 = vld [vmem:[%s4734_s4 + $0xe0] sm:$0xff]  ;;  %v915_v41 = vld [vmem:[%s4734_s4 + $0xe8] sm:$0xff] }
  0x2f   : > { %4220 = vmatprep.subr.bf16.mxu1 %v4219_v18  ;;  %v4233_v42 = vpack.c.bf16 %v897_v39, %v896_v38  ;;  %v4235_v43 = vpack.c.bf16 %v915_v41, %v914_v40  ;;  %v898_v44 = vld [vmem:[%s4734_s4 + $0x60] sm:$0xff]  ;;  %v899_v45 = vld [vmem:[%s4734_s4 + $0x68] sm:$0xff]  ;;  %v916_v46 = vld [vmem:[%s4734_s4 + $0xf0] sm:$0xff] }
  0x30   : > { %v917_v47 = vld [vmem:[%s4734_s4 + $0xf8] sm:$0xff]  ;;  %v900_v48 = vld [vmem:[%s4734_s4 + $0x70] sm:$0xff]  ;;  %v4237_v50 = vpack.c.bf16 %v899_v45, %v898_v44  ;;  %v934_v51 = vld [vmem:[%s4739_s5 + $0x80] sm:$0xff] }
  0x31   : > { %v901_v49 = vld [vmem:[%s4734_s4 + $0x78] sm:$0xff]  ;;  %v935_v52 = vld [vmem:[%s4739_s5 + $0x88] sm:$0xff]  ;;  %v4239_v53 = vpack.c.bf16 %v917_v47, %v916_v46  ;;  %v918_v54 = vld [vmem:[%s4739_s5] sm:$0xff] }
  0x32   : > { %4222 = vmatpush3.bf16.msra.mxu1 %v4221_v23  ;;  %v919_v55 = vld [vmem:[%s4739_s5 + $0x8] sm:$0xff]  ;;  %v4241_v56 = vpack.c.bf16 %v901_v49, %v900_v48  ;;  %v936_v57 = vld [vmem:[%s4739_s5 + $0x90] sm:$0xff]  ;;  %v937_v58 = vld [vmem:[%s4739_s5 + $0x98] sm:$0xff]  ;;  %v4243_v59 = vpack.c.bf16 %v935_v52, %v934_v51 }
  0x33   : > { %4224 = vmatprep.subr.bf16.mxu1 %v4223_v24  ;;  %v4805_v60 = vld [vmem:[#allocation2] sm:$0xff]  ;;  %v920_v61 = vld [vmem:[%s4739_s5 + $0x10] sm:$0xff]  ;;  %v921_v62 = vld [vmem:[%s4739_s5 + $0x18] sm:$0xff]  ;;  %v4245_v0 = vpack.c.bf16 %v919_v55, %v918_v54  ;;  %v4247_v3 = vpack.c.bf16 %v937_v58, %v936_v57 }
  0x34   : > { %v4809_v63 = vld [vmem:[#allocation3 + $0x8] sm:$0xff]  ;;  %v938_v1 = vld [vmem:[%s4739_s5 + $0xa0] sm:$0xff]  ;;  %v939_v2 = vld [vmem:[%s4739_s5 + $0xa8] sm:$0xff]  ;;  %v4249_v6 = vpack.c.bf16 %v921_v62, %v920_v61 }
  0x35   : > { %v922_v4 = vld [vmem:[%s4739_s5 + $0x20] sm:$0xff]  ;;  %v923_v5 = vld [vmem:[%s4739_s5 + $0x28] sm:$0xff]  ;;  %v940_v7 = vld [vmem:[%s4739_s5 + $0xb0] sm:$0xff]  ;;  %v4251_v9 = vpack.c.bf16 %v939_v2, %v938_v1 }
  0x36   : > { %4226 = vmatpush3.bf16.msra.mxu1 %v4225_v30  ;;  %v941_v8 = vld [vmem:[%s4739_s5 + $0xb8] sm:$0xff]  ;;  %v924_v10 = vld [vmem:[%s4739_s5 + $0x30] sm:$0xff]  ;;  %v4253_v12 = vpack.c.bf16 %v923_v5, %v922_v4  ;;  %v942_v13 = vld [vmem:[%s4739_s5 + $0xc0] sm:$0xff] }
  0x37   : > { %4228 = vmatprep.subr.bf16.mxu1 %v4227_v31  ;;  %v925_v11 = vld [vmem:[%s4739_s5 + $0x38] sm:$0xff]  ;;  %v943_v14 = vld [vmem:[%s4739_s5 + $0xc8] sm:$0xff]  ;;  %v4255_v15 = vpack.c.bf16 %v941_v8, %v940_v7  ;;  %v926_v18 = vld [vmem:[%s4739_s5 + $0x40] sm:$0xff] }
  0x38   : > { %v4257_v16 = vpack.c.bf16 %v925_v11, %v924_v10  ;;  %v4259_v17 = vpack.c.bf16 %v943_v14, %v942_v13  ;;  %v927_v19 = vld [vmem:[%s4739_s5 + $0x48] sm:$0xff]  ;;  %v944_v20 = vld [vmem:[%s4739_s5 + $0xd0] sm:$0xff]  ;;  %v945_v21 = vld [vmem:[%s4739_s5 + $0xd8] sm:$0xff] }
  0x39   : > { %v4261_v22 = vpack.c.bf16 %v927_v19, %v926_v18  ;;  %v4263_v23 = vpack.c.bf16 %v945_v21, %v944_v20  ;;  %v928_v24 = vld [vmem:[%s4739_s5 + $0x50] sm:$0xff]  ;;  %v929_v25 = vld [vmem:[%s4739_s5 + $0x58] sm:$0xff]  ;;  %v946_v26 = vld [vmem:[%s4739_s5 + $0xe0] sm:$0xff] }
  0x3a   : > { %4230 = vmatpush3.bf16.msra.mxu1 %v4229_v36  ;;  %v947_v27 = vld [vmem:[%s4739_s5 + $0xe8] sm:$0xff]  ;;  %v4265_v28 = vpack.c.bf16 %v929_v25, %v928_v24  ;;  %v930_v31 = vld [vmem:[%s4739_s5 + $0x60] sm:$0xff]  ;;  %v948_v33 = vld [vmem:[%s4739_s5 + $0xf0] sm:$0xff]  ;;  %v4576_v25 = vmov 0  }
  0x3b   : > { %4232 = vmatprep.subr.bf16.mxu1 %v4231_v37  ;;  %v4267_v30 = vpack.c.bf16 %v947_v27, %v946_v26  ;;  %v931_v32 = vld [vmem:[%s4739_s5 + $0x68] sm:$0xff]  ;;  %v949_v34 = vld [vmem:[%s4739_s5 + $0xf8] sm:$0xff]  ;;  %v932_v37 = vld [vmem:[%s4739_s5 + $0x70] sm:$0xff]  ;;  %4442 = vset.pattern.permute.xlu0 %v4576_v25  ;;  %v953_v27 = vpack.c.bf16 %v4782_v29, %v4782_v29 }
  0x3c   : > { %v4269_v35 = vpack.c.bf16 %v931_v32, %v930_v31  ;;  %v4271_v36 = vpack.c.bf16 %v949_v34, %v948_v33  ;;  %v933_v38 = vld [vmem:[%s4739_s5 + $0x78] sm:$0xff]  ;;  %v4837_v40 = vld [vmem:[#allocation3] sm:$0xff]  ;;  %v950_v41 = vld [vmem:[%s4744_s25] sm:$0x3]  ;;  %4443 = vset.pattern.permute.xlu1 %v4576_v25 }
  0x3d   : > { %v4273_v39 = vpack.c.bf16 %v933_v38, %v932_v37  ;;  %v4854_v44 = vld [vmem:[%s5425_s24] sm:$0xff]   ;;  %v4448_v48 = vld [vmem:[%s4729_s1 + $0x14] ss:$8 sps:$4 sm:$0xff]   ;;  %v4450_v49 = vld [vmem:[%s4729_s1 + $0x10] ss:$8 sps:$4 sm:$0xff]   ;;  %1146 = vmatprep.mubr.bf16.mxu0 %v953_v27  ;;  %s5429_s24 = smov %s5428_s29 }
  0x3e   : > { %4234 = vmatpush3.bf16.msra.mxu1 %v4233_v42  ;;  %v847_v42 = vld [vmem:[%s5424_s8] sm:$0xff]  ;;  %v4857_v45 = vunpack.c.l.bf16 %v4854_v44  ;;  %v4454_v52 = vld [vmem:[%s4729_s1 + $0x34] ss:$8 sps:$4 sm:$0xff]   ;;  %v4462_v57 = vld [vmem:[%s4729_s1 + $0x50] ss:$8 sps:$4 sm:$0xff]   ;;  %v4893_v19 = vunpack.c.h.bf16 %v4854_v44 }
  0x3f   : > { %4236 = vmatprep.subr.bf16.mxu1 %v4235_v43  ;;  %v848_v43 = vld [vmem:[%s5424_s8 + $0x8] sm:$0xff]  ;;  %v4466_v61 = vld [vmem:[%s4729_s1 + $0x74] ss:$8 sps:$4 sm:$0xff]   ;;  %v4468_v62 = vld [vmem:[%s4729_s1 + $0x70] ss:$8 sps:$4 sm:$0xff]  }
  0x40   : > { %v4445_v46 = vld [vmem:[%s4729_s1 + $0x4] ss:$8 sps:$4 sm:$0xff]   ;;  %v4447_v47 = vld [vmem:[%s4729_s1] ss:$8 sps:$4 sm:$0xff]   ;;  %v4472_v2 = vld [vmem:[%s4729_s1 + $0x94] ss:$8 sps:$4 sm:$0xff]  }
  0x41   : > { %1114 = vmatprep.subr.bf16.mxu0 %v4445_v46  ;;  %v4453_v51 = vld [vmem:[%s4729_s1 + $0x20] ss:$8 sps:$4 sm:$0xff]   ;;  %v4457_v54 = vld [vmem:[%s4729_s1 + $0x44] ss:$8 sps:$4 sm:$0xff]   ;;  %v4480_v7 = vld [vmem:[%s4729_s1 + $0xb0] ss:$8 sps:$4 sm:$0xff]  }
  0x42   : > { %4238 = vmatpush3.bf16.msra.mxu1 %v4237_v50  ;;  %1115 = vmatpush1.bf16.msra.mxu0 %v4447_v47  ;;  %v4451_v50 = vld [vmem:[%s4729_s1 + $0x24] ss:$8 sps:$4 sm:$0xff]   ;;  %v4459_v55 = vld [vmem:[%s4729_s1 + $0x40] ss:$8 sps:$4 sm:$0xff]   ;;  %v4484_v10 = vld [vmem:[%s4729_s1 + $0xd4] ss:$8 sps:$4 sm:$0xff]  }
  0x43   : > { %4240 = vmatprep.subr.bf16.mxu1 %v4239_v53  ;;  %1116 = vmatprep.subr.bf16.mxu0 %v4448_v48  ;;  %v4456_v53 = vld [vmem:[%s4729_s1 + $0x30] ss:$8 sps:$4 sm:$0xff]   ;;  %v4463_v58 = vld [vmem:[%s4729_s1 + $0x64] ss:$8 sps:$4 sm:$0xff]   ;;  %v4471_v1 = vld [vmem:[%s4729_s1 + $0x80] ss:$8 sps:$4 sm:$0xff]  }
  0x44   : > { %v4475_v4 = vld [vmem:[%s4729_s1 + $0xa4] ss:$8 sps:$4 sm:$0xff]   ;;  %v4477_v5 = vld [vmem:[%s4729_s1 + $0xa0] ss:$8 sps:$4 sm:$0xff]   ;;  %v4486_v11 = vld [vmem:[%s4729_s1 + $0xd0] ss:$8 sps:$4 sm:$0xff]  }
  0x45   : > { %v4481_v8 = vld [vmem:[%s4729_s1 + $0xc4] ss:$8 sps:$4 sm:$0xff]   ;;  %v4490_v24 = vld [vmem:[%s4729_s1 + $0xf4] ss:$8 sps:$4 sm:$0xff]   ;;  %v4492_v26 = vld [vmem:[%s4729_s1 + $0xf0] ss:$8 sps:$4 sm:$0xff]  }
  0x46   : > { %4242 = vmatpush3.bf16.msra.mxu1 %v4241_v56  ;;  %1117 = vmatpush1.bf16.msra.mxu0 %v4450_v49  ;;  %v4460_v56 = vld [vmem:[%s4729_s1 + $0x54] ss:$8 sps:$4 sm:$0xff]   ;;  %vm1616_vm6 = vcmp.gt.f32.partialorder %v4857_v45, 0.0  ;;  %vm1617_vm7 = vcmp.gt.f32.partialorder %v4893_v19, 0.0 }
  0x47   : > { %4244 = vmatprep.subr.bf16.mxu1 %v4243_v59  ;;  %1118 = vmatprep.subr.bf16.mxu0 %v4451_v50  ;;  %v4465_v59 = vld [vmem:[%s4729_s1 + $0x60] ss:$8 sps:$4 sm:$0xff]   ;;  %v3762_v27 = vld [vmem:[%s4734_s4 + $0x118] sm:$0xff] }
  0x49   : > { %1220 = vmatmul.mubr.f32.vlgmr.msra.gmra.mrb[0].mxu1 %v4805_v60 }
  0x4a   : > { %4246 = vmatpush3.bf16.msra.mxu1 %v4245_v0  ;;  %1289 = vmatprep.mubr.f32.mxu1 %v4809_v63  ;;  %v4469_v0 = vld [vmem:[%s4729_s1 + $0x84] ss:$8 sps:$4 sm:$0xff]  }
  0x4b   : > { %4248 = vmatprep.subr.bf16.mxu1 %v4247_v3  ;;  %1119 = vmatpush1.bf16.msra.mxu0 %v4453_v51  ;;  %v4474_v3 = vld [vmem:[%s4729_s1 + $0x90] ss:$8 sps:$4 sm:$0xff]  }
  0x4c   : > { %1120 = vmatprep.subr.bf16.mxu0 %v4454_v52 }
  0x4e   : > { %4250 = vmatpush3.bf16.msra.mxu1 %v4249_v6  ;;  %v4478_v6 = vld [vmem:[%s4729_s1 + $0xb4] ss:$8 sps:$4 sm:$0xff]  }
  0x4f   : > { %4252 = vmatprep.subr.bf16.mxu1 %v4251_v9  ;;  %1121 = vmatpush1.bf16.msra.mxu0 %v4456_v53  ;;  %v4483_v9 = vld [vmem:[%s4729_s1 + $0xc0] ss:$8 sps:$4 sm:$0xff]  }
  0x50   : > { %1122 = vmatprep.subr.bf16.mxu0 %v4457_v54 }
  0x52   : > { %4254 = vmatpush3.bf16.msra.mxu1 %v4253_v12 }
  0x53   : > { %4256 = vmatprep.subr.bf16.mxu1 %v4255_v15  ;;  %1123 = vmatpush1.bf16.msra.mxu0 %v4459_v55 }
  0x54   : > { %1124 = vmatprep.subr.bf16.mxu0 %v4460_v56 }
  0x56   : > { %4258 = vmatpush3.bf16.msra.mxu1 %v4257_v16  ;;  %v849_v16 = vld [vmem:[%s5426_s26] sm:$0xff]   ;;  %s5430_s26 = sld [smem:[#allocation13_spill]] }
  0x57   : > { %4260 = vmatprep.subr.bf16.mxu1 %v4259_v17  ;;  %1125 = vmatpush1.bf16.msra.mxu0 %v4462_v57  ;;  %v1381_v20 = vunpack.c.l.bf16 %v849_v16  ;;  %v1382_v21 = vunpack.c.h.bf16 %v849_v16 }
  0x58   : > { %1126 = vmatprep.subr.bf16.mxu0 %v4463_v58 }
  0x5a   : > { %4262 = vmatpush3.bf16.msra.mxu1 %v4261_v22  ;;  %v4487_v22 = vld [vmem:[%s4729_s1 + $0xe4] ss:$8 sps:$4 sm:$0xff]  }
  0x5b   : > { %4264 = vmatprep.subr.bf16.mxu1 %v4263_v23  ;;  %1127 = vmatpush1.bf16.msra.mxu0 %v4465_v59  ;;  %v4489_v23 = vld [vmem:[%s4729_s1 + $0xe0] ss:$8 sps:$4 sm:$0xff]  }
  0x5c   : > { %1128 = vmatprep.subr.bf16.mxu0 %v4466_v61 }
  0x5e   : > { %4266 = vmatpush3.bf16.msra.mxu1 %v4265_v28  ;;  %v952_v28 = vpack.c.bf16 %v4805_v60, %v4805_v60 }
  0x5f   : > { %4268 = vmatprep.subr.bf16.mxu1 %v4267_v30  ;;  %1129 = vmatpush1.bf16.msra.mxu0 %v4468_v62 }
  0x60   : > { %1130 = vmatprep.subr.bf16.mxu0 %v4469_v0  ;;  %v4577_v0 = vmov 0.0|0.0  }
  0x62   : > { %4270 = vmatpush3.bf16.msra.mxu1 %v4269_v35 }
  0x63   : > { %4272 = vmatprep.subr.bf16.mxu1 %v4271_v36  ;;  %1131 = vmatpush1.bf16.msra.mxu0 %v4471_v1  ;;  %v4579_v1 = vmov 0.0  }
  0x64   : > { %1132 = vmatprep.subr.bf16.mxu0 %v4472_v2 }
  0x66   : > { %4274 = vmatpush3.bf16.msra.mxu1 %v4273_v39 }
  0x67   : > { %4144 = vmatprep.subr.msk.mxu1 %vm1302_vm0, %v950_v41  ;;  %1133 = vmatpush1.bf16.msra.mxu0 %v4474_v3 }
  0x68   : > { %1134 = vmatprep.subr.bf16.mxu0 %v4475_v4 }
  0x69   : > { %1290 = vmatmul.mubr.f32.vlgmr.msra.gmra.mrb[2].mxu1 %v4837_v40 }
  0x6a   : > { %4146 = vmatprep.mubr.msk.f32.mxu1 %vm1295_vm1, %v847_v42  ;;  %4145 = vmatpush3.msk.msra.mxu1 %vm1302_vm0, %v950_v41 }
  0x6b   : > { %1135 = vmatpush1.bf16.msra.mxu0 %v4477_v5 }
  0x6c   : > { %1136 = vmatprep.subr.bf16.mxu0 %v4478_v6 }
  0x6d   : > { %4147 = vmatmul.mubr.msk.f32.vlgmr.msra.gmra.mrb[4].mxu1 %vm1295_vm1, %v848_v43 }
  0x6e   : > { %4151 = vmatprep.mubr.msk.f32.mxu1 %vm1392_vm2, %v4857_v45 }
  0x6f   : > { %1137 = vmatpush1.bf16.msra.mxu0 %v4480_v7 }
  0x70   : > { %1138 = vmatprep.subr.bf16.mxu0 %v4481_v8 }
  0x73   : > { %1139 = vmatpush1.bf16.msra.mxu0 %v4483_v9 }
  0x74   : > { %1140 = vmatprep.subr.bf16.mxu0 %v4484_v10  ;;  %v3775_v10 = vld [vmem:[%s4734_s4 + $0x180] sm:$0xff] }
  0x77   : > { %1141 = vmatpush1.bf16.msra.mxu0 %v4486_v11  ;;  %v3776_v11 = vld [vmem:[%s4734_s4 + $0x188] sm:$0xff] }
  0x78   : > { %1142 = vmatprep.subr.bf16.mxu0 %v4487_v22 }
  0x7b   : > { %1143 = vmatpush1.bf16.msra.mxu0 %v4489_v23 }
  0x7c   : > { %1144 = vmatprep.subr.bf16.mxu0 %v4490_v24 }
  0x7f   : > { %1145 = vmatpush1.bf16.msra.mxu0 %v4492_v26  ;;  %v3761_v26 = vld [vmem:[%s4734_s4 + $0x110] sm:$0xff] }
  0x82   : > { %1147 = vmatmul.mubr.bf16.vlgmr.msra.gmra.mrb[0].mxu0 %v952_v28  ;;  %v3779_v28 = vld [vmem:[%s4734_s4 + $0x1a0] sm:$0xff] }
  0x83   : > { %1435 = vmatprep.mubr.bf16.mxu0 %v4576_v25 }
 0x11c   : > { %v3931_v12 = vpop.f32.mrb[0].mxu1 }
 0x11d   : > { %v3932_v13 = vpop.f32.mrb[1].mxu1 }
 0x11e   : > { %v3933_v14 = vadd.f32 %v3932_v13, %v3931_v12  ;;  %v4936_v13 = vld [vmem:[%s5427_s30] sm:$0xf]  ;;  %s5431_s30 = sld [smem:[#allocation12_spill]] }
 0x11f   : > { %v1714_v22 = vunpack.c.l.bf16 %v4936_v13 }
 0x13c   : > { %v3966_v15 = vpop.f32.mrb[2].mxu1 }
 0x13d   : > { %v3967_v17 = vpop.f32.mrb[3].mxu1 }
 0x13e   : > { %v3968_v18 = vadd.f32 %v3967_v17, %v3966_v15  ;;  %v4278_v15 = vpack.c.bf16 %v3776_v11, %v3775_v10  ;;  %v3760_v17 = vld [vmem:[%s4734_s4 + $0x108] sm:$0xff] }
 0x140   : > { %4149 = vmatprep.subr.mxu1 %v3968_v18 }
 0x141   : > { %4150 = vmatpush3.msra.mxu1 %v3968_v18 }
 0x142   : > { %4152 = vmatmul.mubr.msk.f32.vlgmr.msra.gmra.mrb[4].mxu1 %vm1392_vm2, %v4893_v19  ;;  %4154 = vmatprep.subr.mxu1 %v3933_v14 }
 0x143   : > { %4155 = vmatpush3.msra.mxu1 %v3933_v14  ;;  %4156 = vmatprep.mubr.msk.f32.mxu1 %vm1392_vm2, %v1381_v20  ;;  %v3777_v20 = vld [vmem:[%s4734_s4 + $0x190] sm:$0xff] }
 0x144   : > { %4275 = vmatprep.subr.bf16.mxu1 %v4577_v0 }
 0x14a   : > { %4157 = vmatmul.mubr.msk.f32.vlgmr.msra.gmra.mrb[4].mxu1 %vm1392_vm2, %v1382_v21  ;;  %v3778_v21 = vld [vmem:[%s4734_s4 + $0x198] sm:$0xff] }
 0x14b   : > { %4163 = vmatprep.mubr.msk.f32.mxu1 %vm4578_vm8, %v4579_v1  ;;  %v4282_v24 = vpack.c.bf16 %v3778_v21, %v3777_v20  ;;  %v3793_v21 = vld [vmem:[%s4739_s5 + $0x110] sm:$0xff] }
 0x155   : > { %v1148_v36 = vpop.f32.mrb[0].mxu0 }
 0x156   : > { %v1385_v37 = vpack.c.bf16 %v1148_v36, %v1148_v36  ;;  %v1150_v38 = vpop.f32.mrb[1].mxu0  ;;  %v3782_v36 = vld [vmem:[%s4734_s4 + $0x1b8] sm:$0xff] }
 0x157   : > { %v1386_v39 = vpack.c.bf16 %v1150_v38, %v1150_v38  ;;  %v1152_v41 = vpop.f32.mrb[2].mxu0 }
 0x158   : > { %v1398_v42 = vsel %vm1396_vm5, %v1385_v37, 0  ;;  %v1153_v43 = vpop.f32.mrb[3].mxu0  ;;  %v3766_v41 = vld [vmem:[%s4734_s4 + $0x138] sm:$0xff] }
 0x159   : > { %3719 = vmatprep.subr.msk.bf16.mxu0 %vm1396_vm5, %v1386_v39  ;;  %v3765_v39 = vld [vmem:[%s4734_s4 + $0x130] sm:$0xff]  ;;  %v3784_v43 = vld [vmem:[%s4734_s4 + $0x1c8] sm:$0xff] }
 0x15a   : > { %1404 = vmatpush1.bf16.msra.mxu0 %v1398_v42  ;;  %v3783_v42 = vld [vmem:[%s4734_s4 + $0x1c0] sm:$0xff] }
 0x15d   : > { %3720 = vmatmul.mubr.msk.bf16.vlgmr.msra.gmra.mrb[4].mxu0 %vm1392_vm2, %v849_v16  ;;  %v3759_v16 = vld [vmem:[%s4734_s4 + $0x100] sm:$0xff] }
 0x15e   : > { %1705 = vmatprep.mubr.bf16.mxu0 %v4576_v25  ;;  %v4280_v23 = vpack.c.bf16 %v3760_v17, %v3759_v16  ;;  %v3809_v16 = vld [vmem:[%s4739_s5 + $0x190] sm:$0xff]  ;;  %v3810_v17 = vld [vmem:[%s4739_s5 + $0x198] sm:$0xff] }
 0x15f   : > { %v4314_v20 = vpack.c.bf16 %v3810_v17, %v3809_v16  ;;  %v4499_v16 = vld [vmem:[%s4729_s1 + $0x114] ss:$8 sps:$4 sm:$0xff]   ;;  %v4502_v17 = vld [vmem:[%s4729_s1 + $0x124] ss:$8 sps:$4 sm:$0xff]  }
 0x21d   : > { %v4158_v30 = vpop.f32.mrb[4].mxu1 }
 0x21e   : > { %v1599_v31 = vpop.f32.mrb[5].mxu1  ;;  %v1613_v33 = vmul.f32 0.2, %v4158_v30  ;;  %vm1611_vm4 = vcmp.gt.f32.partialorder %v4158_v30, 0.0 }
 0x21f   : > { %v1612_v32 = vmul.f32 0.2, %v1599_v31  ;;  %vm1610_vm3 = vcmp.gt.f32.partialorder %v1599_v31, 0.0 }
 0x220   : > { %v1615_v35 = vsel %vm1611_vm4, %v4158_v30, %v1613_v33  ;;  %v3780_v30 = vld [vmem:[%s4734_s4 + $0x1a8] sm:$0xff]  ;;  %v3763_v33 = vld [vmem:[%s4734_s4 + $0x120] sm:$0xff] }
 0x221   : > { %v1614_v34 = vsel %vm1610_vm3, %v1599_v31, %v1612_v32  ;;  %v4284_v31 = vpack.c.bf16 %v3762_v27, %v3761_v26  ;;  %v4286_v32 = vpack.c.bf16 %v3780_v30, %v3779_v28  ;;  %v3795_v28 = vld [vmem:[%s4739_s5 + $0x120] sm:$0xff]  ;;  %v3796_v30 = vld [vmem:[%s4739_s5 + $0x128] sm:$0xff]  ;;  %vm3591_vm3 = vcmask (!%p3869_p6), 74752  }
 0x222   : > { %1620 = vperm.xlu0 %4442, %v1614_v34  }
 0x226   : > { %1625 = vperm.xlu0 %4442, %v1615_v35  }
 0x230   : > { %v4925_v7 = vpop.f32.mrb[4].mxu0 }
 0x231   : > { %v4927_v9 = vpop.f32.mrb[5].mxu0 }
 0x232   : > { %v4931_v12 = vpop.f32.mrb[6].mxu0 }
 0x233   : > { %v4940_v18 = vpop.f32.mrb[7].mxu0 }
 0x2a1   : > { %v1621_v44 = vpop.permute.xlu0 %1620 }
 0x2a2   : > { %v1628_v46 = vsel %vm1616_vm6, %v1621_v44, -1e+30  ;;  %v4292_v44 = vpack.c.bf16 %v3766_v41, %v3765_v39  ;;  %v3799_v41 = vld [vmem:[%s4739_s5 + $0x140] sm:$0xff] }
 0x2a3   : > { %v1630_v49 = vsel %vm1392_vm2, %v1628_v46, -inf  ;;  %v4294_v46 = vpack.c.bf16 %v3784_v43, %v3783_v42  ;;  %v3800_v42 = vld [vmem:[%s4739_s5 + $0x148] sm:$0xff]  ;;  %v3817_v43 = vld [vmem:[%s4739_s5 + $0x1d0] sm:$0xff] }
 0x2a5   : > { %v1626_v47 = vpop.permute.xlu0 %1625 }
 0x2a6   : > { %v1629_v48 = vsel %vm1617_vm7, %v1626_v47, -1e+30  ;;  %v3767_v47 = vld [vmem:[%s4734_s4 + $0x140] sm:$0xff] }
 0x2a7   : > { %v1631_v50 = vsel %vm1392_vm2, %v1629_v48, -inf  ;;  %v3768_v48 = vld [vmem:[%s4734_s4 + $0x148] sm:$0xff] }
 0x2a8   : > { %v1632_v51 = vmax.f32 %v1630_v49, %v1631_v50  ;;  %v3785_v49 = vld [vmem:[%s4734_s4 + $0x1d0] sm:$0xff]  ;;  %v3786_v50 = vld [vmem:[%s4734_s4 + $0x1d8] sm:$0xff] }
 0x2aa   : > { %v1633_v52 = vrot.slane %v1632_v51, 4 }
 0x2ac   : > { %v1634_v53 = vmax.f32 %v1632_v51, %v1633_v52  ;;  %v4296_v51 = vpack.c.bf16 %v3768_v48, %v3767_v47  ;;  %v4298_v52 = vpack.c.bf16 %v3786_v50, %v3785_v49  ;;  %v3801_v48 = vld [vmem:[%s4739_s5 + $0x150] sm:$0xff]  ;;  %v3802_v49 = vld [vmem:[%s4739_s5 + $0x158] sm:$0xff]  ;;  %v3819_v50 = vld [vmem:[%s4739_s5 + $0x1e0] sm:$0xff] }
 0x2ae   : > { %v1635_v54 = vrot.slane %v1634_v53, 2 }
 0x2b0   : > { %v1636_v55 = vmax.f32 %v1634_v53, %v1635_v54  ;;  %v3769_v53 = vld [vmem:[%s4734_s4 + $0x150] sm:$0xff]  ;;  %v3770_v54 = vld [vmem:[%s4734_s4 + $0x158] sm:$0xff] }
 0x2b2   : > { %v1637_v56 = vrot.slane %v1636_v55, 1 }
 0x2b4   : > { %v1638_v57 = vmax.f32 %v1636_v55, %v1637_v56  ;;  %v3787_v55 = vld [vmem:[%s4734_s4 + $0x1e0] sm:$0xff]  ;;  %v3788_v56 = vld [vmem:[%s4734_s4 + $0x1e8] sm:$0xff] }
 0x2b6   : > { %v1639_v58 = vmul.f32 %v4857_v45, %v1638_v57  ;;  %v1640_v61 = vmul.f32 %v4893_v19, %v1638_v57  ;;  %v4300_v57 = vpack.c.bf16 %v3770_v54, %v3769_v53  ;;  %v3803_v54 = vld [vmem:[%s4739_s5 + $0x160] sm:$0xff] }
 0x2b8   : > { %v1641_v59 = vsel %vm1392_vm2, %v1639_v58, 0.0  ;;  %v1644_v62 = vsel %vm1392_vm2, %v1640_v61, 0.0  ;;  %v4302_v58 = vpack.c.bf16 %v3788_v56, %v3787_v55  ;;  %v3772_v61 = vld [vmem:[%s4734_s4 + $0x168] sm:$0xff]  ;;  %v3821_v56 = vld [vmem:[%s4739_s5 + $0x1f0] sm:$0xff] }
 0x2b9   : > { %1642 = vadd.xlane.f32.xlu1 %v1641_v59  ;;  %v3771_v59 = vld [vmem:[%s4734_s4 + $0x160] sm:$0xff]  ;;  %v3804_v55 = vld [vmem:[%s4739_s5 + $0x168] sm:$0xff] }
 0x2bd   : > { %1645 = vadd.xlane.f32.xlu1 %v1644_v62  ;;  %v3789_v62 = vld [vmem:[%s4734_s4 + $0x1f0] sm:$0xff] }
 0x346   : > { %v1643_v2 = vpop.xlane.xlu1 %1642 }
 0x347   : > { %v1647_v45 = vsub.f32 %v1614_v34, %v1643_v2  ;;  %v3764_v34 = vld [vmem:[%s4734_s4 + $0x128] sm:$0xff]  ;;  %v3790_v2 = vld [vmem:[%s4734_s4 + $0x1f8] sm:$0xff] }
 0x348   : > { %v4288_v37 = vpack.c.bf16 %v3764_v34, %v3763_v33  ;;  %v4320_v33 = vpack.c.bf16 %v3796_v30, %v3795_v28  ;;  %v4512_v28 = vld [vmem:[%s4729_s1 + $0x160] ss:$8 sps:$4 sm:$0xff]   ;;  %v4517_v30 = vld [vmem:[%s4729_s1 + $0x174] ss:$8 sps:$4 sm:$0xff]  }
 0x349   : > { %v1649_v3 = vmul.f32 1.442695, %v1647_v45  ;;  %v4304_v45 = vpack.c.bf16 %v3772_v61, %v3771_v59  ;;  %v3805_v61 = vld [vmem:[%s4739_s5 + $0x170] sm:$0xff] }
 0x34a   : > { %v1646_v4 = vpop.xlane.xlu1 %1645 }
 0x34b   : > { %4544 = vpow2.f32 %v1649_v3  ;;  %v1648_v5 = vsub.f32 %v1615_v35, %v1646_v4  ;;  %v3781_v35 = vld [vmem:[%s4734_s4 + $0x1b0] sm:$0xff]  ;;  %v4306_v3 = vpack.c.bf16 %v3790_v2, %v3789_v62  ;;  %v3806_v62 = vld [vmem:[%s4739_s5 + $0x178] sm:$0xff] }
 0x34c   : > { %v4290_v38 = vpack.c.bf16 %v3782_v36, %v3781_v35  ;;  %v3773_v4 = vld [vmem:[%s4734_s4 + $0x170] sm:$0xff]  ;;  %v3798_v36 = vld [vmem:[%s4739_s5 + $0x138] sm:$0xff]  ;;  %v4340_v2 = vpack.c.bf16 %v3806_v62, %v3805_v61  ;;  %v1920_v62 = vpack.c.bf16 %v4809_v63, %v4809_v63 }
 0x34d   : > { %v1651_v6 = vmul.f32 1.442695, %v1648_v5  ;;  %v3774_v5 = vld [vmem:[%s4734_s4 + $0x178] sm:$0xff]  ;;  %v3797_v35 = vld [vmem:[%s4739_s5 + $0x130] sm:$0xff]  ;;  %s5433_s4 = sld [smem:[#allocation7_spill]] (!%p3869_p6) }
 0x34e   : > { %v4308_v10 = vpack.c.bf16 %v3774_v5, %v3773_v4  ;;  %v1810_v4 = vld [vmem:[%s5429_s24 + $0x8] sm:$0xff]  ;;  %v4539_v61 = vld [vmem:[%s4729_s1 + $0x1f0] ss:$8 sps:$4 sm:$0xff]  }
 0x34f   : > { %4546 = vpow2.f32 %v1651_v6  ;;  %v3807_v6 = vld [vmem:[%s4739_s5 + $0x180] sm:$0xff] }
 0x355   : > { %v4545_v8 = vpop.eup %4544 }
 0x356   : > { %1655 = vperm.xlu0 %4442, %v4545_v8  }
 0x359   : > { %v4547_v14 = vpop.eup %4546 }
 0x35a   : > { %1660 = vperm.xlu1 %4443, %v4547_v14   ;;  %v4276_v19 = vpack.c.bf16 %v4547_v14, %v4545_v8  ;;  %v3808_v8 = vld [vmem:[%s4739_s5 + $0x188] sm:$0xff]  ;;  %v3791_v14 = vld [vmem:[%s4739_s5 + $0x100] sm:$0xff] }
 0x35b   : > { %v4310_v11 = vpack.c.bf16 %v3808_v8, %v3807_v6 }
 0x35c   : > { %4277 = vmatpush3.bf16.msra.mxu1 %v4276_v19 }
 0x35d   : > { %4279 = vmatprep.subr.bf16.mxu1 %v4278_v15  ;;  %v3792_v15 = vld [vmem:[%s4739_s5 + $0x108] sm:$0xff] }
 0x35e   : > { %v4312_v19 = vpack.c.bf16 %v3792_v15, %v3791_v14 }
 0x35f   : > { %4164 = vmatmul.mubr.msk.f32.vlgmr.msra.gmra.mrb[6].mxu1 %vm1669_vm9, %v1714_v22  ;;  %v3794_v22 = vld [vmem:[%s4739_s5 + $0x118] sm:$0xff] }
 0x360   : > { %4281 = vmatpush3.bf16.msra.mxu1 %v4280_v23  ;;  %2186 = vmatprep.mubr.f32.mxu1 %v4809_v63  ;;  %v3811_v23 = vld [vmem:[%s4739_s5 + $0x1a0] sm:$0xff]  ;;  %v4316_v26 = vpack.c.bf16 %v3794_v22, %v3793_v21  ;;  %v4503_v21 = vld [vmem:[%s4729_s1 + $0x130] ss:$8 sps:$4 sm:$0xff]  }
 0x361   : > { %4283 = vmatprep.subr.bf16.mxu1 %v4282_v24  ;;  %v3812_v24 = vld [vmem:[%s4739_s5 + $0x1a8] sm:$0xff] }
 0x362   : > { %v4318_v27 = vpack.c.bf16 %v3812_v24, %v3811_v23  ;;  %v4508_v22 = vld [vmem:[%s4729_s1 + $0x144] ss:$8 sps:$4 sm:$0xff]   ;;  %v4506_v23 = vld [vmem:[%s4729_s1 + $0x140] ss:$8 sps:$4 sm:$0xff]   ;;  %v4511_v24 = vld [vmem:[%s4729_s1 + $0x154] ss:$8 sps:$4 sm:$0xff]  }
 0x364   : > { %4285 = vmatpush3.bf16.msra.mxu1 %v4284_v31  ;;  %v3813_v31 = vld [vmem:[%s4739_s5 + $0x1b0] sm:$0xff] }
 0x365   : > { %4287 = vmatprep.subr.bf16.mxu1 %v4286_v32  ;;  %v3814_v32 = vld [vmem:[%s4739_s5 + $0x1b8] sm:$0xff] }
 0x366   : > { %v4322_v34 = vpack.c.bf16 %v3814_v32, %v3813_v31  ;;  %v4515_v31 = vld [vmem:[%s4729_s1 + $0x170] ss:$8 sps:$4 sm:$0xff]   ;;  %v4520_v32 = vld [vmem:[%s4729_s1 + $0x184] ss:$8 sps:$4 sm:$0xff]  }
 0x368   : > { %4289 = vmatpush3.bf16.msra.mxu1 %v4288_v37  ;;  %v3815_v37 = vld [vmem:[%s4739_s5 + $0x1c0] sm:$0xff] }
 0x369   : > { %4291 = vmatprep.subr.bf16.mxu1 %v4290_v38  ;;  %v4324_v38 = vpack.c.bf16 %v3798_v36, %v3797_v35  ;;  %v4521_v35 = vld [vmem:[%s4729_s1 + $0x190] ss:$8 sps:$4 sm:$0xff]   ;;  %v4526_v36 = vld [vmem:[%s4729_s1 + $0x1a4] ss:$8 sps:$4 sm:$0xff]  }
 0x36c   : > { %4293 = vmatpush3.bf16.msra.mxu1 %v4292_v44  ;;  %v3818_v44 = vld [vmem:[%s4739_s5 + $0x1d8] sm:$0xff] }
 0x36d   : > { %4295 = vmatprep.subr.bf16.mxu1 %v4294_v46  ;;  %v4328_v46 = vpack.c.bf16 %v3800_v42, %v3799_v41  ;;  %v4330_v47 = vpack.c.bf16 %v3818_v44, %v3817_v43  ;;  %v4530_v41 = vld [vmem:[%s4729_s1 + $0x1c0] ss:$8 sps:$4 sm:$0xff]   ;;  %v4535_v42 = vld [vmem:[%s4729_s1 + $0x1d4] ss:$8 sps:$4 sm:$0xff]  }
 0x370   : > { %4297 = vmatpush3.bf16.msra.mxu1 %v4296_v51  ;;  %v3820_v51 = vld [vmem:[%s4739_s5 + $0x1e8] sm:$0xff] }
 0x371   : > { %4299 = vmatprep.subr.bf16.mxu1 %v4298_v52  ;;  %v4332_v52 = vpack.c.bf16 %v3802_v49, %v3801_v48  ;;  %v4334_v53 = vpack.c.bf16 %v3820_v51, %v3819_v50  ;;  %v4536_v48 = vld [vmem:[%s4729_s1 + $0x1e0] ss:$8 sps:$4 sm:$0xff]  }
 0x374   : > { %4301 = vmatpush3.bf16.msra.mxu1 %v4300_v57  ;;  %v3822_v57 = vld [vmem:[%s4739_s5 + $0x1f8] sm:$0xff] }
 0x375   : > { %4303 = vmatprep.subr.bf16.mxu1 %v4302_v58  ;;  %v4336_v58 = vpack.c.bf16 %v3804_v55, %v3803_v54  ;;  %v4338_v59 = vpack.c.bf16 %v3822_v57, %v3821_v56 }
 0x378   : > { %4305 = vmatpush3.bf16.msra.mxu1 %v4304_v45  ;;  %v3823_v45 = vld [vmem:[%s4744_s25 + $0x2] sm:$0x3]  ;;  %s4583_s25 = smov (!%p3869_p6), 123  }
 0x379   : > { %4307 = vmatprep.subr.bf16.mxu1 %v4306_v3  ;;  %v1809_v3 = vld [vmem:[%s5428_s29] sm:$0xff]  ;;  %s845_s29 = scalar_select %p844_p5, 1, 0 }
 0x37b   : > { %s846_s7 = scvt.s32.f32 %s845_s29 }
 0x37c   : > { %4309 = vmatpush3.bf16.msra.mxu1 %v4308_v10 }
 0x37d   : > { %4311 = vmatprep.subr.bf16.mxu1 %v4310_v11 }
 0x37f   : > { %2187 = vmatmul.mubr.f32.vlgmr.msra.gmra.mrb[8].mxu1 %v4837_v40 }
 0x380   : > { %4313 = vmatpush3.bf16.msra.mxu1 %v4312_v19  ;;  %2256 = vmatprep.mubr.f32.mxu1 %v4782_v29  ;;  %v3816_v29 = vld [vmem:[%s4739_s5 + $0x1c8] sm:$0xff] }
 0x381   : > { %4315 = vmatprep.subr.bf16.mxu1 %v4314_v20  ;;  %v4326_v39 = vpack.c.bf16 %v3816_v29, %v3815_v37  ;;  %v4500_v19 = vld [vmem:[%s4729_s1 + $0x120] ss:$8 sps:$4 sm:$0xff]   ;;  %v4505_v20 = vld [vmem:[%s4729_s1 + $0x134] ss:$8 sps:$4 sm:$0xff]  }
 0x382   : > { %v4524_v37 = vld [vmem:[%s4729_s1 + $0x1a0] ss:$8 sps:$4 sm:$0xff]   ;;  %v4529_v29 = vld [vmem:[%s4729_s1 + $0x1b4] ss:$8 sps:$4 sm:$0xff]  }
 0x384   : > { %4317 = vmatpush3.bf16.msra.mxu1 %v4316_v26  ;;  %v4509_v26 = vld [vmem:[%s4729_s1 + $0x150] ss:$8 sps:$4 sm:$0xff]  }
 0x385   : > { %4319 = vmatprep.subr.bf16.mxu1 %v4318_v27  ;;  %v4514_v27 = vld [vmem:[%s4729_s1 + $0x164] ss:$8 sps:$4 sm:$0xff]  }
 0x388   : > { %4321 = vmatpush3.bf16.msra.mxu1 %v4320_v33  ;;  %v4518_v33 = vld [vmem:[%s4729_s1 + $0x180] ss:$8 sps:$4 sm:$0xff]  }
 0x389   : > { %4323 = vmatprep.subr.bf16.mxu1 %v4322_v34  ;;  %v4523_v34 = vld [vmem:[%s4729_s1 + $0x194] ss:$8 sps:$4 sm:$0xff]  }
 0x38c   : > { %4325 = vmatpush3.bf16.msra.mxu1 %v4324_v38  ;;  %v4527_v38 = vld [vmem:[%s4729_s1 + $0x1b0] ss:$8 sps:$4 sm:$0xff]  }
 0x38d   : > { %4327 = vmatprep.subr.bf16.mxu1 %v4326_v39  ;;  %v4532_v39 = vld [vmem:[%s4729_s1 + $0x1c4] ss:$8 sps:$4 sm:$0xff]  }
 0x390   : > { %4329 = vmatpush3.bf16.msra.mxu1 %v4328_v46  ;;  %v4533_v46 = vld [vmem:[%s4729_s1 + $0x1d0] ss:$8 sps:$4 sm:$0xff]  }
 0x391   : > { %4331 = vmatprep.subr.bf16.mxu1 %v4330_v47  ;;  %v4538_v47 = vld [vmem:[%s4729_s1 + $0x1e4] ss:$8 sps:$4 sm:$0xff]  }
 0x394   : > { %4333 = vmatpush3.bf16.msra.mxu1 %v4332_v52 }
 0x395   : > { %4335 = vmatprep.subr.bf16.mxu1 %v4334_v53  ;;  %v1811_v53 = vld [vmem:[%s5431_s30] sm:$0xff]  }
 0x396   : > { %v2346_v57 = vunpack.c.l.bf16 %v1811_v53 }
 0x398   : > { %4337 = vmatpush3.bf16.msra.mxu1 %v4336_v58  ;;  %v2347_v58 = vunpack.c.h.bf16 %v1811_v53 }
 0x399   : > { %4339 = vmatprep.subr.bf16.mxu1 %v4338_v59  ;;  %v4541_v59 = vld [vmem:[%s4729_s1 + $0x1f4] ss:$8 sps:$4 sm:$0xff]  }
 0x39c   : > { %4341 = vmatpush3.bf16.msra.mxu1 %v4340_v2  ;;  %v1919_v2 = vpack.c.bf16 %v4837_v40, %v4837_v40 }
 0x39d   : > { %4166 = vmatprep.subr.msk.mxu1 %vm1302_vm0, %v3823_v45 }
 0x39f   : > { %2257 = vmatmul.mubr.f32.vlgmr.msra.gmra.mrb[10].mxu1 %v4805_v60 }
 0x3a0   : > { %4168 = vmatprep.mubr.msk.f32.mxu1 %vm1295_vm1, %v1809_v3  ;;  %4167 = vmatpush3.msk.msra.mxu1 %vm1302_vm0, %v3823_v45 }
 0x3a3   : > { %4169 = vmatmul.mubr.msk.f32.vlgmr.msra.gmra.mrb[12].mxu1 %vm1295_vm1, %v1810_v4 }
 0x3d5   : > { %v1656_v5 = vpop.permute.xlu0 %1655 }
 0x3d6   : > { %v1663_v6 = vmul.f32 %v1656_v5, %v4925_v7  ;;  %v1664_v8 = vmul.f32 %v1656_v5, %v4927_v9  ;;  %v5028_v7 = vld [vmem:[%s5430_s26] sm:$0xff]   ;;  %s5435_s26 = sld [smem:[#allocation16_spill]] (!%p3869_p6) }
 0x3d7   : > { %v5031_v9 = vunpack.c.l.bf16 %v5028_v7  ;;  %v3898_v56 = vunpack.c.h.bf16 %v5028_v7 }
 0x3d9   : > { %v1661_v60 = vpop.permute.xlu1 %1660  ;;  %4173 = vmatprep.mubr.msk.f32.mxu1 %vm1392_vm2, %v5031_v9  ;;  %vm2579_vm12 = vcmp.gt.f32.partialorder %v5031_v9, 0.0  ;;  %vm2580_vm13 = vcmp.gt.f32.partialorder %v3898_v56, 0.0 }
 0x3da   : > { %v1665_v10 = vmul.f32 %v1661_v60, %v4931_v12  ;;  %v1666_v11 = vmul.f32 %v1661_v60, %v4940_v18  ;;  %v4494_v12 = vld [vmem:[%s4729_s1 + $0x100] ss:$8 sps:$4 sm:$0xff]   ;;  %v4496_v18 = vld [vmem:[%s4729_s1 + $0x104] ss:$8 sps:$4 sm:$0xff]  }
 0x3dc   : > { %v1667_v14 = vpack.c.bf16 %v1665_v10, %v1663_v6  ;;  %v1668_v15 = vpack.c.bf16 %v1666_v11, %v1664_v8 }
 0x3de   : > { %1673 = vmatprep.subr.bf16.mxu0 %v1668_v15 }
 0x3df   : > { %1674 = vmatpush1.bf16.msra.mxu0 %v1667_v14 }
 0x3e0   : > { %2081 = vmatprep.subr.bf16.mxu0 %v4496_v18 }
 0x3e2   : > { %3725 = vmatmul.mubr.msk.bf16.vlgmr.msra.gmra.mrb[8].mxu0 %vm1669_vm9, %v4936_v13  ;;  %v4497_v13 = vld [vmem:[%s4729_s1 + $0x110] ss:$8 sps:$4 sm:$0xff]  }
 0x3e3   : > { %2082 = vmatpush1.bf16.msra.mxu0 %v4494_v12  ;;  %2113 = vmatprep.mubr.bf16.mxu0 %v1920_v62 }
 0x3e4   : > { %2083 = vmatprep.subr.bf16.mxu0 %v4499_v16 }
 0x3e7   : > { %2084 = vmatpush1.bf16.msra.mxu0 %v4497_v13 }
 0x3e8   : > { %2085 = vmatprep.subr.bf16.mxu0 %v4502_v17 }
 0x3eb   : > { %2086 = vmatpush1.bf16.msra.mxu0 %v4500_v19 }
 0x3ec   : > { %2087 = vmatprep.subr.bf16.mxu0 %v4505_v20 }
 0x3ef   : > { %2088 = vmatpush1.bf16.msra.mxu0 %v4503_v21 }
 0x3f0   : > { %2089 = vmatprep.subr.bf16.mxu0 %v4508_v22 }
 0x3f3   : > { %2090 = vmatpush1.bf16.msra.mxu0 %v4506_v23 }
 0x3f4   : > { %2091 = vmatprep.subr.bf16.mxu0 %v4511_v24 }
 0x3f7   : > { %2092 = vmatpush1.bf16.msra.mxu0 %v4509_v26 }
 0x3f8   : > { %2093 = vmatprep.subr.bf16.mxu0 %v4514_v27 }
 0x3fb   : > { %2094 = vmatpush1.bf16.msra.mxu0 %v4512_v28 }
 0x3fc   : > { %2095 = vmatprep.subr.bf16.mxu0 %v4517_v30 }
 0x3ff   : > { %2096 = vmatpush1.bf16.msra.mxu0 %v4515_v31 }
 0x400   : > { %2097 = vmatprep.subr.bf16.mxu0 %v4520_v32 }
 0x403   : > { %2098 = vmatpush1.bf16.msra.mxu0 %v4518_v33 }
 0x404   : > { %2099 = vmatprep.subr.bf16.mxu0 %v4523_v34 }
 0x407   : > { %2100 = vmatpush1.bf16.msra.mxu0 %v4521_v35 }
 0x408   : > { %2101 = vmatprep.subr.bf16.mxu0 %v4526_v36 }
 0x40b   : > { %2102 = vmatpush1.bf16.msra.mxu0 %v4524_v37 }
 0x40c   : > { %2103 = vmatprep.subr.bf16.mxu0 %v4529_v29 }
 0x40f   : > { %2104 = vmatpush1.bf16.msra.mxu0 %v4527_v38 }
 0x410   : > { %2105 = vmatprep.subr.bf16.mxu0 %v4532_v39 }
 0x413   : > { %2106 = vmatpush1.bf16.msra.mxu0 %v4530_v41 }
 0x414   : > { %2107 = vmatprep.subr.bf16.mxu0 %v4535_v42 }
 0x417   : > { %2108 = vmatpush1.bf16.msra.mxu0 %v4533_v46 }
 0x418   : > { %2109 = vmatprep.subr.bf16.mxu0 %v4538_v47 }
 0x41b   : > { %2110 = vmatpush1.bf16.msra.mxu0 %v4536_v48 }
 0x41c   : > { %2111 = vmatprep.subr.bf16.mxu0 %v4541_v59 }
 0x41f   : > { %2112 = vmatpush1.bf16.msra.mxu0 %v4539_v61 }
 0x422   : > { %2114 = vmatmul.mubr.bf16.vlgmr.msra.gmra.mrb[12].mxu0 %v1919_v2 }
 0x423   : > { %2398 = vmatprep.mubr.bf16.mxu0 %v4576_v25 }
 0x432   : > { %v5062_v43 = vpop.f32.mrb[6].mxu1 }
 0x433   : > { %v4165_v44 = vpop.f32.mrb[7].mxu1  ;;  %v1785_v38 = vadd.f32 1e-16, %v5062_v43 }
 0x434   : > { %v1815_v44 = vld [vmem:[%s5432_s9] sm:$0xf] }
 0x452   : > { %v4013_v49 = vpop.f32.mrb[8].mxu1 }
 0x453   : > { %v4014_v50 = vpop.f32.mrb[9].mxu1 }
 0x454   : > { %v4015_v51 = vadd.f32 %v4014_v50, %v4013_v49  ;;  %v2676_v49 = vunpack.c.l.bf16 %v1815_v44  ;;  %v1797_v50 = vlaneseq }
 0x472   : > { %v4048_v52 = vpop.f32.mrb[10].mxu1 }
 0x473   : > { %v4049_v54 = vpop.f32.mrb[11].mxu1 }
 0x474   : > { %v4050_v55 = vadd.f32 %v4049_v54, %v4048_v52 }
 0x476   : > { %4171 = vmatprep.subr.mxu1 %v4050_v55 }
 0x477   : > { %4172 = vmatpush3.msra.mxu1 %v4050_v55 }
 0x478   : > { %4174 = vmatmul.mubr.msk.f32.vlgmr.msra.gmra.mrb[12].mxu1 %vm1392_vm2, %v3898_v56  ;;  %4176 = vmatprep.subr.mxu1 %v4015_v51 }
 0x479   : > { %4177 = vmatpush3.msra.mxu1 %v4015_v51  ;;  %4178 = vmatprep.mubr.msk.f32.mxu1 %vm1392_vm2, %v2346_v57  ;;  %v1798_v51 = vshrl.u32 %v1797_v50, 7  ;;  %v4581_v50 = vmov (!%p3869_p6), 0.0|0.0  }
 0x47a   : > { %4342 = vmatprep.subr.bf16.mxu1 %v4577_v0 }
 0x47b   : > { %v1803_v54 = vsub.s32 1, %v1798_v51 }
 0x480   : > { %4179 = vmatmul.mubr.msk.f32.vlgmr.msra.gmra.mrb[12].mxu1 %vm1392_vm2, %v2347_v58  ;;  %v951_v58 = vld [vmem:[%s4749_s3] sm:$0x3] }
 0x481   : > { %4185 = vmatprep.mubr.msk.f32.mxu1 %vm4578_vm8, %v4579_v1 }
 0x4b5   : > { %v5084_v60 = vpop.f32.mrb[8].mxu0 }
 0x4b6   : > { %v5086_v63 = vpop.f32.mrb[9].mxu0 }
 0x4b7   : > { %v1711_v6 = vpop.f32.mrb[10].mxu0 }
 0x4b8   : > { %v1712_v40 = vpop.f32.mrb[11].mxu0  ;;  %v4556_v6 = vld [vmem:[#allocation3] sm:$0xff] }
 0x4f5   : > { %v2115_v8 = vpop.f32.mrb[12].mxu0 }
 0x4f6   : > { %v2350_v10 = vpack.c.bf16 %v2115_v8, %v2115_v8  ;;  %v2117_v11 = vpop.f32.mrb[13].mxu0  ;;  %v4557_v8 = vld [vmem:[#allocation3 + $0x8] sm:$0xff] }
 0x4f7   : > { %v2351_v14 = vpack.c.bf16 %v2117_v11, %v2117_v11  ;;  %v2119_v15 = vpop.f32.mrb[14].mxu0 }
 0x4f8   : > { %v2361_v7 = vsel %vm1396_vm5, %v2350_v10, 0  ;;  %v2120_v12 = vpop.f32.mrb[15].mxu0 }
 0x4f9   : > { %3861 = vmatprep.subr.msk.bf16.mxu0 %vm1396_vm5, %v2351_v14 }
 0x4fa   : > { %2367 = vmatpush1.bf16.msra.mxu0 %v2361_v7 }
 0x4fd   : > { %3862 = vmatmul.mubr.msk.bf16.vlgmr.msra.gmra.mrb[16].mxu0 %vm1392_vm2, %v1811_v53  ;;  %v1799_v53 = vsub.s32 0, %v1798_v51  ;;  %v3318_v51 = vld [vmem:[%s5399_s22 + $0x80] sm:$0xff] (!%p3869_p6) }
 0x4fe   : > { %2667 = vmatprep.mubr.bf16.mxu0 %v4576_v25 }
 0x553   : > { %v4180_v0 = vpop.f32.mrb[12].mxu1 }
 0x554   : > { %v2562_v45 = vpop.f32.mrb[13].mxu1  ;;  %v2576_v4 = vmul.f32 0.2, %v4180_v0  ;;  %vm2574_vm11 = vcmp.gt.f32.partialorder %v4180_v0, 0.0 }
 0x555   : > { %vm2573_vm10 = vcmp.gt.f32.partialorder %v2562_v45, 0.0  ;;  %v2575_v3 = vmul.f32 0.2, %v2562_v45 }
 0x556   : > { %v2578_v5 = vsel %vm2574_vm11, %v4180_v0, %v2576_v4  ;;  %v1800_v0 = vrot.slane %v951_v58, %v1799_v53 }
 0x557   : > { %v2577_v1 = vsel %vm2573_vm10, %v2562_v45, %v2575_v3  ;;  %v1804_v45 = vrot.slane %v951_v58, %v1803_v54  ;;  %v2773_v3 = vstv %s846_s7  ;;  %v3321_v58 = vld [vmem:[%s5399_s22 + $0x98] sm:$0xff] (!%p3869_p6) }
 0x558   : > { %2583 = vperm.xlu0 %4442, %v2577_v1   ;;  %v2780_v40 = vmul.f32 %v4556_v6, %v2773_v3  ;;  %v2781_v10 = vmul.f32 %v4557_v8, %v2773_v3  ;;  %v3324_v6 = vld [vmem:[%s5399_s22 + $0xb0] sm:$0xff] (!%p3869_p6) }
 0x55c   : > { %2588 = vperm.xlu0 %4442, %v2578_v5  }
 0x5d0   : > { %v2400_v39 = vpop.f32.mrb[16].mxu0 }
 0x5d7   : > { %v2584_v18 = vpop.permute.xlu0 %2583 }
 0x5d8   : > { %v2591_v16 = vsel %vm2579_vm12, %v2584_v18, -1e+30 }
 0x5d9   : > { %v2593_v19 = vsel %vm1392_vm2, %v2591_v16, -inf }
 0x5db   : > { %v2589_v13 = vpop.permute.xlu0 %2588 }
 0x5dc   : > { %v2592_v17 = vsel %vm2580_vm13, %v2589_v13, -1e+30 }
 0x5dd   : > { %v2594_v20 = vsel %vm1392_vm2, %v2592_v17, -inf }
 0x5de   : > { %v2595_v21 = vmax.f32 %v2593_v19, %v2594_v20 }
 0x5e0   : > { %v2596_v22 = vrot.slane %v2595_v21, 4 }
 0x5e2   : > { %v2597_v23 = vmax.f32 %v2595_v21, %v2596_v22  ;;  %v3824_v22 = vld [vmem:[%s4749_s3 + $0x2] sm:$0x3] }
 0x5e4   : > { %v2598_v24 = vrot.slane %v2597_v23, 2 }
 0x5e6   : > { %v2599_v26 = vmax.f32 %v2597_v23, %v2598_v24  ;;  %v2762_v23 = vrot.slane %v3824_v22, %v1799_v53  ;;  %v2766_v24 = vrot.slane %v3824_v22, %v1803_v54  ;;  %v3302_v54 = vld [vmem:[%s5399_s22] sm:$0xff] (!%p3869_p6) }
 0x5e7   : > { %v3330_v22 = vld [vmem:[%s5399_s22 + $0xe0] sm:$0xff] (!%p3869_p6) }
 0x5e8   : > { %v2600_v27 = vrot.slane %v2599_v26, 1 }
 0x5ea   : > { %v2601_v28 = vmax.f32 %v2599_v26, %v2600_v27 }
 0x5ec   : > { %v2603_v30 = vmul.f32 %v3898_v56, %v2601_v28  ;;  %v2602_v25 = vmul.f32 %v5031_v9, %v2601_v28  ;;  %v2402_v9 = vpop.f32.mrb[17].mxu0 }
 0x5ed   : > { %v2404_v41 = vpop.f32.mrb[18].mxu0 }
 0x5ee   : > { %v2607_v31 = vsel %vm1392_vm2, %v2603_v30, 0.0  ;;  %v2604_v32 = vsel %vm1392_vm2, %v2602_v25, 0.0  ;;  %v2406_v47 = vpop.f32.mrb[19].mxu0  ;;  %v4558_v30 = vld [vmem:[#allocation2] sm:$0xff] }
 0x5ef   : > { %2608 = vadd.xlane.f32.xlu1 %v2607_v31  ;;  %2605 = vadd.xlane.f32.xlu0 %v2604_v32  ;;  %v2774_v25 = vmul.f32 %v4558_v30, %v2773_v3  ;;  %v3332_v30 = vld [vmem:[%s5399_s22 + $0xf0] sm:$0xff] (!%p3869_p6) }
 0x67c   : > { %v2609_v33 = vpop.xlane.xlu1 %2608  ;;  %v2606_v34 = vpop.xlane.xlu0 %2605 }
 0x67d   : > { %v2611_v35 = vsub.f32 %v2578_v5, %v2609_v33  ;;  %v2610_v36 = vsub.f32 %v2577_v1, %v2606_v34  ;;  %v4559_v33 = vld [vmem:[#allocation2 + $0x8] sm:$0xff] }
 0x67e   : > { %v2775_v34 = vmul.f32 %v4559_v33, %v2773_v3  ;;  %v3317_v33 = vld [vmem:[%s5399_s22 + $0x78] sm:$0xff] (!%p3869_p6) }
 0x67f   : > { %v2614_v37 = vmul.f32 1.442695, %v2611_v35  ;;  %v2612_v29 = vmul.f32 1.442695, %v2610_v36 }
 0x681   : > { %4548 = vpow2.f32 %v2614_v37 }
 0x682   : > { %4550 = vpow2.f32 %v2612_v29 }
 0x683   : > { %4552 = vrcp.f32 %v1785_v38  ;;  %v2792_v38 = vld [vmem:[%s5392_s15] sm:$0x3] (!%p3869_p6) }
 0x68b   : > { %v4549_v42 = vpop.eup %4548 }
 0x68c   : > { %v4551_v46 = vpop.eup %4550  ;;  %2623 = vperm.xlu1 %4443, %v4549_v42  }
 0x68d   : > { %2618 = vperm.xlu0 %4442, %v4551_v46   ;;  %v4343_v48 = vpack.c.bf16 %v4549_v42, %v4551_v46  ;;  %v4553_v43 = vpop.eup %4552  ;;  %v3102_v46 = vld [vmem:[%s5396_s19] sm:$0x3] (!%p3869_p6) }
 0x68f   : > { %4344 = vmatpush3.bf16.msra.mxu1 %v4343_v48 }
 0x691   : > { %1791 = vperm.xlu0 %4442, %v4553_v43  }
 0x692   : > { %4186 = vmatmul.mubr.msk.f32.vlgmr.msra.gmra.mrb[14].mxu1 %vm1669_vm9, %v2676_v49  ;;  %v3101_v49 = vld [vmem:[%s5433_s4 + $0x8] sm:$0xff] (!%p3869_p6) }
 0x70b   : > { %v2624_v52 = vpop.permute.xlu1 %2623 }
 0x70c   : > { %v2628_v55 = vmul.f32 %v2624_v52, %v2404_v41  ;;  %v2619_v56 = vpop.permute.xlu0 %2618  ;;  %v2629_v57 = vmul.f32 %v2624_v52, %v2406_v47  ;;  %v3100_v47 = vld [vmem:[%s5433_s4] sm:$0xff] (!%p3869_p6)  ;;  %v3319_v52 = vld [vmem:[%s5399_s22 + $0x88] sm:$0xff] (!%p3869_p6) }
 0x70d   : > { %v2626_v59 = vmul.f32 %v2619_v56, %v2400_v39  ;;  %v2627_v61 = vmul.f32 %v2619_v56, %v2402_v9  ;;  %v4580_v39 = vmov (!%p3869_p6), 0.0   ;;  %v2867_v9 = vld [vmem:[%s5393_s16] sm:$0x3] (!%p3869_p6)  ;;  %v4348_v53 = vpack.c.bf16 (!%p3869_p6), %v3319_v52, %v3318_v51  ;;  %v3287_v52 = vld [vmem:[%s5398_s21 + $0x88] sm:$0xff] (!%p3869_p6) }
 0x70e   : > { %2860 = vmatprep.mubr.f32.mxu1 (!%p3869_p6), %v4580_v39  ;;  %v3286_v51 = vld [vmem:[%s5398_s21 + $0x80] sm:$0xff] (!%p3869_p6) }
 0x70f   : > { %v2630_v62 = vpack.c.bf16 %v2628_v55, %v2626_v59  ;;  %v2631_v2 = vpack.c.bf16 %v2629_v57, %v2627_v61  ;;  %v3303_v55 = vld [vmem:[%s5399_s22 + $0x8] sm:$0xff] (!%p3869_p6)  ;;  %v3320_v57 = vld [vmem:[%s5399_s22 + $0x90] sm:$0xff] (!%p3869_p6) }
 0x710   : > { %v1792_v4 = vpop.permute.xlu0 %1791  ;;  %v4350_v56 = vpack.c.bf16 (!%p3869_p6), %v3303_v55, %v3302_v54  ;;  %v4352_v59 = vpack.c.bf16 (!%p3869_p6), %v3321_v58, %v3320_v57  ;;  %v3304_v61 = vld [vmem:[%s5399_s22 + $0x10] sm:$0xff] (!%p3869_p6)  ;;  %v3270_v57 = vld [vmem:[%s5398_s21] sm:$0xff] (!%p3869_p6)  ;;  %v3271_v58 = vld [vmem:[%s5398_s21 + $0x8] sm:$0xff] (!%p3869_p6) }
 0x711   : > { %v1794_v1 = vmul.f32 %v1792_v4, %v5084_v60  ;;  %v1795_v5 = vmul.f32 %v1792_v4, %v5086_v63  ;;  %2635 = vmatprep.subr.bf16.mxu0 %v2631_v2  ;;  %v3306_v4 = vld [vmem:[%s5399_s22 + $0x20] sm:$0xff] (!%p3869_p6) }
 0x712   : > { %2636 = vmatpush1.bf16.msra.mxu0 %v2630_v62  ;;  %v3305_v62 = vld [vmem:[%s5399_s22 + $0x18] sm:$0xff] (!%p3869_p6) }
 0x713   : > { %v1807_v11 = vadd.f32 %v1800_v0, %v1794_v1  ;;  %v1808_v14 = vadd.f32 %v1804_v45, %v1795_v5  ;;  %v4354_v2 = vpack.c.bf16 (!%p3869_p6), %v3305_v62, %v3304_v61  ;;  %v3322_v0 = vld [vmem:[%s5399_s22 + $0xa0] sm:$0xff] (!%p3869_p6)  ;;  %v3323_v45 = vld [vmem:[%s5399_s22 + $0xa8] sm:$0xff] (!%p3869_p6)  ;;  %v3288_v61 = vld [vmem:[%s5398_s21 + $0x90] sm:$0xff] (!%p3869_p6) }
 0x714   : > { %v4356_v3 = vpack.c.bf16 (!%p3869_p6), %v3323_v45, %v3322_v0  ;;  %v3307_v1 = vld [vmem:[%s5399_s22 + $0x28] sm:$0xff] (!%p3869_p6)  ;;  %v3196_v62 = vld [vmem:[%s5394_s17] sm:$0x3] (!%p3869_p6)  ;;  %v3273_v45 = vld [vmem:[%s5398_s21 + $0x18] sm:$0xff] (!%p3869_p6) }
 0x715   : > { %v2778_v15 = vmax.f32 %v1807_v11, 0.0  ;;  %v2779_v7 = vmax.f32 %v1808_v14, 0.0  ;;  %3867 = vmatmul.mubr.msk.bf16.vlgmr.msra.gmra.mrb[20].mxu0 %vm1669_vm9, %v1815_v44  ;;  %v2942_v44 = vld [vmem:[%s5395_s18] sm:$0x3] (!%p3869_p6)  ;;  %v4358_v5 = vpack.c.bf16 (!%p3869_p6), %v3307_v1, %v3306_v4  ;;  %v3309_v11 = vld [vmem:[%s5399_s22 + $0x38] sm:$0xff] (!%p3869_p6)  ;;  %v3291_v4 = vld [vmem:[%s5398_s21 + $0xa8] sm:$0xff] (!%p3869_p6) }
 0x716   : > { %3016 = vmatprep.mubr.f32.mxu0 (!%p3869_p6), %v4580_v39 }
 0x717   : > { %v2782_v12 = vadd.f32 %v2780_v40, %v2778_v15  ;;  %v2783_v18 = vadd.f32 %v2781_v10, %v2779_v7  ;;  %v3325_v40 = vld [vmem:[%s5399_s22 + $0xb8] sm:$0xff] (!%p3869_p6)  ;;  %v3308_v10 = vld [vmem:[%s5399_s22 + $0x30] sm:$0xff] (!%p3869_p6)  ;;  %v3326_v15 = vld [vmem:[%s5399_s22 + $0xc0] sm:$0xff] (!%p3869_p6) }
 0x718   : > { %v4360_v8 = vpack.c.bf16 (!%p3869_p6), %v3325_v40, %v3324_v6  ;;  %v4362_v14 = vpack.c.bf16 (!%p3869_p6), %v3309_v11, %v3308_v10  ;;  %v3327_v7 = vld [vmem:[%s5399_s22 + $0xc8] sm:$0xff] (!%p3869_p6)  ;;  %v3274_v6 = vld [vmem:[%s5398_s21 + $0x20] sm:$0xff] (!%p3869_p6)  ;;  %v3293_v10 = vld [vmem:[%s5398_s21 + $0xb8] sm:$0xff] (!%p3869_p6) }
 0x719   : > { %2786 = vst [vmem:[#allocation3] sm:$0xff] %v2782_v12  ;;  %2787 = vst [vmem:[#allocation3 + $0x8] sm:$0xff] %v2783_v18  ;;  %v3275_v40 = vld [vmem:[%s5398_s21 + $0x28] sm:$0xff] (!%p3869_p6) }
 0x71a   : > { %v4390_v11 = vpack.c.bf16 (!%p3869_p6), %v3275_v40, %v3274_v6 }
 0x765   : > { %v2746_v60 = vpop.f32.mrb[14].mxu1 }
 0x766   : > { %v2747_v16 = vadd.f32 1e-16, %v2746_v60  ;;  %v4187_v63 = vpop.f32.mrb[15].mxu1  ;;  %v3311_v60 = vld [vmem:[%s5399_s22 + $0x48] sm:$0xff] (!%p3869_p6) }
 0x767   : > { %v3328_v63 = vld [vmem:[%s5399_s22 + $0xd0] sm:$0xff] (!%p3869_p6) }
 0x768   : > { %4554 = vrcp.f32 %v2747_v16 }
 0x772   : > { %v4555_v13 = vpop.eup %4554 }
 0x773   : > { %2753 = vperm.xlu0 %4442, %v4555_v13   ;;  %v3329_v13 = vld [vmem:[%s5399_s22 + $0xd8] sm:$0xff] (!%p3869_p6) }
 0x7e8   : > { %v2669_v17 = vpop.f32.mrb[20].mxu0 }
 0x7e9   : > { %v2671_v19 = vpop.f32.mrb[21].mxu0 }
 0x7ea   : > { %v2673_v20 = vpop.f32.mrb[22].mxu0 }
 0x7eb   : > { %v2674_v21 = vpop.f32.mrb[23].mxu0  ;;  %v3313_v20 = vld [vmem:[%s5399_s22 + $0x58] sm:$0xff] (!%p3869_p6) }
 0x7f2   : > { %v2754_v26 = vpop.permute.xlu0 %2753 }
 0x7f3   : > { %v2756_v27 = vmul.f32 %v2754_v26, %v2669_v17  ;;  %v2757_v28 = vmul.f32 %v2754_v26, %v2671_v19  ;;  %v4368_v17 = vpack.c.bf16 (!%p3869_p6), %v3329_v13, %v3328_v63  ;;  %v3312_v19 = vld [vmem:[%s5399_s22 + $0x50] sm:$0xff] (!%p3869_p6)  ;;  %v3314_v26 = vld [vmem:[%s5399_s22 + $0x60] sm:$0xff] (!%p3869_p6)  ;;  %v3279_v13 = vld [vmem:[%s5398_s21 + $0x48] sm:$0xff] (!%p3869_p6) }
 0x7f4   : > { %v4370_v21 = vpack.c.bf16 (!%p3869_p6), %v3313_v20, %v3312_v19  ;;  %v3278_v63 = vld [vmem:[%s5398_s21 + $0x40] sm:$0xff] (!%p3869_p6)  ;;  %v3297_v19 = vld [vmem:[%s5398_s21 + $0xd8] sm:$0xff] (!%p3869_p6) }
 0x7f5   : > { %v2769_v31 = vadd.f32 %v2762_v23, %v2756_v27  ;;  %v2770_v32 = vadd.f32 %v2766_v24, %v2757_v28  ;;  %2791 = sbr.rel (%p3869_p6) target bundleno = 3345 (0xd11), region = 128  ;;  %v3331_v23 = vld [vmem:[%s5399_s22 + $0xe8] sm:$0xff] (!%p3869_p6)  ;;  %v4398_v20 = vpack.c.bf16 (!%p3869_p6), %v3279_v13, %v3278_v63 }
 0x7f6   : > { %v4372_v24 = vpack.c.bf16 (!%p3869_p6), %v3331_v23, %v3330_v22  ;;  %v3315_v27 = vld [vmem:[%s5399_s22 + $0x68] sm:$0xff] (!%p3869_p6)  ;;  %v3280_v22 = vld [vmem:[%s5398_s21 + $0x50] sm:$0xff] (!%p3869_p6)  ;;  %v3281_v23 = vld [vmem:[%s5398_s21 + $0x58] sm:$0xff] (!%p3869_p6) }
 0x7f7   : > { %v2771_v35 = vmax.f32 %v2769_v31, 0.0  ;;  %v2772_v36 = vmax.f32 %v2770_v32, 0.0  ;;  %v4374_v28 = vpack.c.bf16 (!%p3869_p6), %v3315_v27, %v3314_v26  ;;  %v3316_v32 = vld [vmem:[%s5399_s22 + $0x70] sm:$0xff] (!%p3869_p6)  ;;  %v3299_v26 = vld [vmem:[%s5398_s21 + $0xe8] sm:$0xff] (!%p3869_p6)  ;;  %v4402_v27 = vpack.c.bf16 (!%p3869_p6), %v3281_v23, %v3280_v22 }
 0x7f9   : > { %v2776_v37 = vadd.f32 %v2774_v25, %v2771_v35  ;;  %v2777_v29 = vadd.f32 %v2775_v34, %v2772_v36  ;;  %v3333_v25 = vld [vmem:[%s5399_s22 + $0xf8] sm:$0xff] (!%p3869_p6)  ;;  %v4378_v34 = vpack.c.bf16 (!%p3869_p6), %v3317_v33, %v3316_v32 }
 0x7fa   : > { %v4376_v31 = vpack.c.bf16 (!%p3869_p6), %v3333_v25, %v3332_v30  ;;  %v3282_v30 = vld [vmem:[%s5398_s21 + $0x60] sm:$0xff] (!%p3869_p6)  ;;  %v3283_v25 = vld [vmem:[%s5398_s21 + $0x68] sm:$0xff] (!%p3869_p6)  ;;  %v3301_v32 = vld [vmem:[%s5398_s21 + $0xf8] sm:$0xff] (!%p3869_p6) }
 0x7fb   : > { %2784 = vst [vmem:[#allocation2] sm:$0xff] %v2776_v37  ;;  %2785 = vst [vmem:[#allocation2 + $0x8] sm:$0xff] %v2777_v29  ;;  %2796 = vmatprep.subr.mxu1 (!%p3869_p6), %v2777_v29  ;;  %v3475_v29 = vld [vmem:[%s5400_s23 + $0x8] sm:$0xff] (!%p3869_p6)  ;;  %v4406_v33 = vpack.c.bf16 (!%p3869_p6), %v3283_v25, %v3282_v30 }
 0x7fc   : > { %2797 = vmatpush1.msra.mxu1 %v2776_v37  ;;  %v3474_v37 = vld [vmem:[%s5400_s23] sm:$0xff] }
 0x7fd   : > { %3870 = vmatmul.mubr.msk.f32.vlgmr.msra.gmra.mrb[0].mxu1 %vm1392_vm2, %v2792_v38  ;;  %2871 = vmatprep.subr.mxu1 %v2783_v18  ;;  %v3310_v18 = vld [vmem:[%s5399_s22 + $0x40] sm:$0xff] }
 0x7fe   : > { %2872 = vmatpush1.msra.mxu1 %v2782_v12  ;;  %2935 = vmatprep.mubr.f32.mxu1 %v4580_v39  ;;  %v4364_v12 = vpack.c.bf16 %v3327_v7, %v3326_v15  ;;  %v4366_v16 = vpack.c.bf16 %v3311_v60, %v3310_v18  ;;  %v3878_v38 = vld [vmem:[%s5397_s20] ss:$0 sm:$0xff]  ;;  %v3276_v15 = vld [vmem:[%s5398_s21 + $0x30] sm:$0xff]  ;;  %v3277_v7 = vld [vmem:[%s5398_s21 + $0x38] sm:$0xff] }
 0x7ff   : > { %v3295_v18 = vld [vmem:[%s5398_s21 + $0xc8] sm:$0xff]  ;;  %v4394_v60 = vpack.c.bf16 %v3277_v7, %v3276_v15 }
 0x801   : > { %3871 = vmatmul.mubr.msk.f32.vlgmr.msra.gmra.mrb[2].mxu1 %vm1392_vm2, %v2867_v9  ;;  %vm3589_vm2 = vcmask 39936  }
 0x802   : > { %3093 = vmatprep.mubr.f32.mxu1 %v4580_v39 }
 0x8d0   : > { %v2862_v41 = vpop.f32.mrb[0].mxu1 }
 0x8d1   : > { %v2864_v42 = vpop.f32.mrb[1].mxu1 }
 0x8d2   : > { %3872 = vmatprep.subr.msk.mxu0 %vm1302_vm0, %v2864_v42  ;;  %v4413_v42 = vpack.c.bf16 %v3475_v29, %v3474_v37  ;;  %v3285_v37 = vld [vmem:[%s5398_s21 + $0x78] sm:$0xff] }
 0x8d3   : > { %3873 = vmatpush1.msk.msra.mxu0 %vm1302_vm0, %v2862_v41 }
 0x8d4   : > { %3874 = vmatmul.mubr.msk.f32.vlgmr.msra.gmra.mrb[0].mxu0 %vm1295_vm1, %v2942_v44  ;;  %4188 = vmatprep.subr.msk.mxu0 %vm1302_vm0, %v3102_v46  ;;  %v2937_v48 = vpop.f32.mrb[2].mxu1 }
 0x8d5   : > { %4189 = vmatpush3.msk.msra.mxu0 %vm1302_vm0, %v3102_v46  ;;  %4190 = vmatprep.mubr.msk.f32.mxu0 %vm1295_vm1, %v3100_v47  ;;  %v2939_v43 = vpop.f32.mrb[3].mxu1 }
 0x8d6   : > { %3875 = vmatprep.subr.msk.mxu1 %vm1302_vm0, %v2939_v43  ;;  %4349 = vmatprep.subr.bf16.mxu0 %v4348_v53 }
 0x8d7   : > { %3876 = vmatpush1.msk.msra.mxu1 %vm1302_vm0, %v2937_v48  ;;  %v3476_v48 = vld [vmem:[%s5400_s23 + $0x10] sm:$0xff]  ;;  %vm3573_vm0 = vcmask 74792  }
 0x8d8   : > { %4191 = vmatmul.mubr.msk.f32.vlgmr.msra.gmra.mrb[2].mxu0 %vm1295_vm1, %v3101_v49  ;;  %3877 = vmatmul.mubr.msk.f32.vlgmr.msra.gmra.mrb[4].mxu1 %vm1295_vm1, %v2942_v44  ;;  %v3477_v49 = vld [vmem:[%s5400_s23 + $0x18] sm:$0xff]  ;;  %vm3561_vm1 = vcmask 33792  }
 0x8d9   : > { %4345 = vmatprep.subr.bf16.mxu1 %v4581_v50  ;;  %4197 = vmatprep.mubr.msk.f32.mxu1 %vm4582_vm14, %v4580_v39  ;;  %v4416_v55 = vpack.c.bf16 %v3477_v49, %v3476_v48 }
 0x8da   : > { %4351 = vmatpush3.bf16.msra.mxu0 %v4350_v56  ;;  %v4380_v56 = vpack.c.bf16 %v3287_v52, %v3286_v51  ;;  %v3884_v51 = vld [vmem:[%s5434_s6] ss:$0 sm:$0xff] }
 0x8db   : > { %4353 = vmatprep.subr.bf16.mxu0 %v4352_v59 }
 0x8de   : > { %4355 = vmatpush3.bf16.msra.mxu0 %v4354_v2  ;;  %v4382_v2 = vpack.c.bf16 %v3271_v58, %v3270_v57 }
 0x8df   : > { %4357 = vmatprep.subr.bf16.mxu0 %v4356_v3  ;;  %v3290_v3 = vld [vmem:[%s5398_s21 + $0xa0] sm:$0xff] }
 0x8e2   : > { %4359 = vmatpush3.bf16.msra.mxu0 %v4358_v5  ;;  %v4388_v5 = vpack.c.bf16 %v3291_v4, %v3290_v3 }
 0x8e3   : > { %4361 = vmatprep.subr.bf16.mxu0 %v4360_v8  ;;  %v3292_v8 = vld [vmem:[%s5398_s21 + $0xb0] sm:$0xff] }
 0x8e6   : > { %4363 = vmatpush3.bf16.msra.mxu0 %v4362_v14  ;;  %v4392_v14 = vpack.c.bf16 %v3293_v10, %v3292_v8 }
 0x8e7   : > { %4365 = vmatprep.subr.bf16.mxu0 %v4364_v12  ;;  %v3294_v12 = vld [vmem:[%s5398_s21 + $0xc0] sm:$0xff] }
 0x8ea   : > { %4367 = vmatpush3.bf16.msra.mxu0 %v4366_v16  ;;  %v4396_v16 = vpack.c.bf16 %v3295_v18, %v3294_v12 }
 0x8eb   : > { %4369 = vmatprep.subr.bf16.mxu0 %v4368_v17  ;;  %v3296_v17 = vld [vmem:[%s5398_s21 + $0xd0] sm:$0xff] }
 0x8ee   : > { %4371 = vmatpush3.bf16.msra.mxu0 %v4370_v21  ;;  %v4400_v21 = vpack.c.bf16 %v3297_v19, %v3296_v17 }
 0x8ef   : > { %4373 = vmatprep.subr.bf16.mxu0 %v4372_v24  ;;  %v3298_v24 = vld [vmem:[%s5398_s21 + $0xe0] sm:$0xff] }
 0x8f2   : > { %4375 = vmatpush3.bf16.msra.mxu0 %v4374_v28  ;;  %v4404_v28 = vpack.c.bf16 %v3299_v26, %v3298_v24 }
 0x8f3   : > { %4377 = vmatprep.subr.bf16.mxu0 %v4376_v31  ;;  %v3300_v31 = vld [vmem:[%s5398_s21 + $0xf0] sm:$0xff] }
 0x8f6   : > { %4379 = vmatpush3.bf16.msra.mxu0 %v4378_v34  ;;  %v4408_v34 = vpack.c.bf16 %v3301_v32, %v3300_v31 }
 0x8f7   : > { %4412 = vmatprep.subr.bf16.mxu0 %v4581_v50 }
 0x9a7   : > { %v5244_v35 = vpop.f32.mrb[0].mxu0 }
 0x9a8   : > { %v3020_v36 = vpop.f32.mrb[1].mxu0 }
 0x9ab   : > { %v4192_v9 = vpop.f32.mrb[2].mxu0  ;;  %v3095_v41 = vpop.f32.mrb[4].mxu1 }
 0x9ac   : > { %v3191_v44 = vadd.f32 %v4192_v9, %v3878_v38  ;;  %v3185_v46 = vpop.f32.mrb[3].mxu0  ;;  %v3097_v47 = vpop.f32.mrb[5].mxu1 }
 0x9ad   : > { %v3186_v43 = vadd.f32 %v3878_v38, %v3185_v46  ;;  %3398 = vmatprep.mubr.f32.mxu0 %v3097_v47 }
 0x9ae   : > { %v3195_v53 = vmax.f32 %v3191_v44, 0.0  ;;  %3399 = vmatmul.mubr.f32.vlgmr.msra.gmra.mrb[4].mxu0 %v3095_v41 }
 0x9af   : > { %v3194_v54 = vmax.f32 %v3186_v43, 0.0  ;;  %4414 = vmatpush3.bf16.msra.mxu0 %v4413_v42  ;;  %4208 = vmatprep.mubr.msk.f32.mxu0 %vm4582_vm14, %v4580_v39  ;;  %v3289_v39 = vld [vmem:[%s5398_s21 + $0x98] sm:$0xff] }
 0x9b0   : > { %4415 = vmatprep.subr.bf16.mxu0 %v4581_v50  ;;  %v4384_v0 = vpack.c.bf16 %v3289_v39, %v3288_v61  ;;  %v3272_v50 = vld [vmem:[%s5398_s21 + $0x10] sm:$0xff] }
 0x9b1   : > { %v4346_v59 = vpack.c.bf16 %v3195_v53, %v3194_v54  ;;  %v4386_v1 = vpack.c.bf16 %v3273_v45, %v3272_v50 }
 0x9b3   : > { %4347 = vmatpush3.bf16.msra.mxu1 %v4346_v59  ;;  %4417 = vmatpush3.bf16.msra.mxu0 %v4416_v55 }
 0x9b4   : > { %4381 = vmatprep.subr.bf16.mxu1 %v4380_v56 }
 0x9b6   : > { %4198 = vmatmul.mubr.msk.f32.vlgmr.msra.gmra.mrb[6].mxu1 %vm1669_vm9, %v3196_v62 }
 0x9b7   : > { %4383 = vmatpush3.bf16.msra.mxu1 %v4382_v2  ;;  %3468 = vmatprep.mubr.f32.mxu1 %v3020_v36  ;;  %v3284_v36 = vld [vmem:[%s5398_s21 + $0x70] sm:$0xff] }
 0x9b8   : > { %4385 = vmatprep.subr.bf16.mxu1 %v4384_v0  ;;  %v4410_v29 = vpack.c.bf16 %v3285_v37, %v3284_v36 }
 0x9bb   : > { %4387 = vmatpush3.bf16.msra.mxu1 %v4386_v1 }
 0x9bc   : > { %4389 = vmatprep.subr.bf16.mxu1 %v4388_v5 }
 0x9bf   : > { %4391 = vmatpush3.bf16.msra.mxu1 %v4390_v11 }
 0x9c0   : > { %4393 = vmatprep.subr.bf16.mxu1 %v4392_v14 }
 0x9c3   : > { %4395 = vmatpush3.bf16.msra.mxu1 %v4394_v60 }
 0x9c4   : > { %4397 = vmatprep.subr.bf16.mxu1 %v4396_v16 }
 0x9c7   : > { %4399 = vmatpush3.bf16.msra.mxu1 %v4398_v20 }
 0x9c8   : > { %4401 = vmatprep.subr.bf16.mxu1 %v4400_v21 }
 0x9cb   : > { %4403 = vmatpush3.bf16.msra.mxu1 %v4402_v27 }
 0x9cc   : > { %4405 = vmatprep.subr.bf16.mxu1 %v4404_v28 }
 0x9cf   : > { %4407 = vmatpush3.bf16.msra.mxu1 %v4406_v33 }
 0x9d0   : > { %4409 = vmatprep.subr.bf16.mxu1 %v4408_v34 }
 0x9d3   : > { %4411 = vmatpush3.bf16.msra.mxu1 %v4410_v29 }
 0x9d6   : > { %3469 = vmatmul.mubr.f32.vlgmr.msra.gmra.mrb[8].mxu1 %v5244_v35 }
 0xa81   : > { %v4101_v38 = vpop.f32.mrb[4].mxu0 }
 0xa82   : > { %v4102_v9 = vpop.f32.mrb[5].mxu0 }
 0xa83   : > { %v4103_v41 = vadd.f32 %v4102_v9, %v4101_v38 }
 0xa89   : > { %v3266_v42 = vpop.f32.mrb[6].mxu1 }
 0xa8a   : > { %v4199_v44 = vpop.f32.mrb[7].mxu1  ;;  %4209 = vmatmul.mubr.msk.f32.vlgmr.msra.gmra.mrb[6].mxu0 %vm3478_vm15, %v3266_v42 }
 0xaa9   : > { %v4136_v46 = vpop.f32.mrb[8].mxu1 }
 0xaaa   : > { %v4137_v47 = vpop.f32.mrb[9].mxu1 }
 0xaab   : > { %v4138_v48 = vadd.f32 %v4137_v47, %v4136_v46 }
 0xaad   : > { %v3471_v49 = vadd.f32 %v4138_v48, %v4103_v41 }
 0xb5d   : > { %v3548_v43 = vpop.f32.mrb[6].mxu0 }
 0xb5e   : > { %v3552_v52 = vadd.f32 %v3548_v43, %v3471_v49  ;;  %v4210_v53 = vpop.f32.mrb[7].mxu0 }
 0xb60   : > { %v3560_v35 = vadd.f32 %v3884_v51, %v3552_v52 }
 0xb62   : > { %v3574_v54 = vsel %vm3573_vm0, %v3560_v35, -inf  ;;  %v3562_v55 = vsel %vm3561_vm1, %v3560_v35, -inf }
 0xb63   : > { %3575 = vmax.xlane.f32.xlu0 %v3574_v54 }
 0xb67   : > { %3563 = vmax.xlane.f32.xlu0 %v3562_v55 }
 0xbf0   : > { %v3576_v56 = vpop.xlane.xlu0 %3575 }
 0xbf1   : > { %v3577_v57 = vsub.f32 %v3560_v35, %v3576_v56 }
 0xbf3   : > { %v3578_v58 = vmul.f32 1.442695, %v3577_v57 }
 0xbf4   : > { %v3564_v61 = vpop.xlane.xlu0 %3563 }
 0xbf5   : > { %4560 = vpow2.f32 %v3578_v58  ;;  %v3565_v39 = vsub.f32 %v3560_v35, %v3564_v61 }
 0xbf7   : > { %v3566_v62 = vmul.f32 1.442695, %v3565_v39 }
 0xbf9   : > { %4562 = vpow2.f32 %v3566_v62 }
 0xbff   : > { %v4561_v59 = vpop.eup %4560 }
 0xc00   : > { %3581 = vrot.lane.b32.xlu1 %v4561_v59, %s4583_s25 }
 0xc03   : > { %v4563_v2 = vpop.eup %4562 }
 0xc04   : > { %v3568_v0 = vsel %vm3561_vm1, %v4563_v2, 0.0 }
 0xc24   : > { %3569 = vadd.xlane.f32.xlu1 %v3568_v0 }
 0xc72   : > { %v3582_v50 = vpop.permute.xlu1 %3581 }
 0xc73   : > { %v3584_v45 = vsel %vm3561_vm1, %v3582_v50, 0.0 }
 0xc74   : > { %3585 = vadd.xlane.f32.xlu0 %v3584_v45 }
 0xcb1   : > { %v3570_v3 = vpop.xlane.xlu1 %3569 }
 0xcb2   : > { %4564 = vrcp.f32 %v3570_v3 }
 0xcbc   : > { %v4565_v1 = vpop.eup %4564 }
 0xcbd   : > { %v3572_v6 = vmul.f32 %v4565_v1, %v4563_v2 }
 0xd01   : > { %v3586_v4 = vpop.xlane.xlu0 %3585 }
 0xd02   : > { %4566 = vrcp.f32 %v3586_v4 }
 0xd0c   : > { %v4567_v5 = vpop.eup %4566 }
 0xd0d   : > { %v3588_v40 = vmul.f32 %v4567_v5, %v4561_v59 }
 0xd0f   : > { %v3590_v8 = vsel %vm3589_vm2, %v3572_v6, %v3588_v40 }
 0xd10   : > { %3592 = vst.msk [vmem:[%s5435_s26] sm:$0x3] %vm3591_vm3, %v3590_v8 }
 0xd11 PF: > { %s5436_s8 = sld [smem:[#allocation4_spill]] }
 0xd17   : > { %s35_s29 = sadd.s32 1, %s5436_s8  }
 0xd18   : > { %p32_p7 = scmp.ge.s32.totalorder %s35_s29, 10  }
 0xd1a   :  { %34 = sbr.rel (!%p32_p7) target bundleno = 13 (0xd), region = 171 }

</bundles_post_ra>
